<compile_context>
chip_gen: v6e
topology: v6e:2x2x1
jax: 0.10.0
libtpu: 0.0.40
codegen_flags: <defaults>
</compile_context>

<pallas_src>
import functools

import jax
import jax.numpy as jnp
from jax import lax
from jax.experimental import pallas as pl
from jax.experimental.pallas import tpu as pltpu


def _round_up(v, m):
    return ((v + m - 1) // m) * m


def _fused_dw_kernel(x_ref, w_ref, b_ref, m_ref, o_ref, buf_ref, *,
                     H, W, K, S, G, Cin, Cout, Cpad, number_layers):
    """One batch element per grid step; all layers fused.

    x_ref  : (1, Cin, S)           input, flattened NCHW (S = H*W on lanes)
    w_ref  : (L, Cpad, K*K*Cpad)   per-layer weights, flat (cout, kh,kw,cin)
    b_ref  : (L, Cpad, 1)          per-layer biases
    m_ref  : (K, 1, G+S+G)         0/1 column-validity masks on BUFFER lanes
    o_ref  : (1, Cout, S)          output, flattened NCHW (lane-dense store)
    buf_ref: (Cpad, G + S + G)     activation + zero lane-guards, VMEM scratch
    """
    p = K // 2
    GW = G + S + G

    # Residual (original input), also used to seed the activation buffer.
    res = x_ref[0].astype(jnp.float32)                       # (Cin, S)
    if Cpad > Cin:
        x0 = jnp.concatenate(
            [res, jnp.zeros((Cpad - Cin, S), jnp.float32)], axis=0)
    else:
        x0 = res

    # Zero only the lane guards (2*Cpad*G elems) + lane-aligned center seed.
    # Guards are re-zeroed every step so the kernel stays correct when the batch
    # grid axis is sharded across megacore TCs (each core owns its own scratch).
    zg = jnp.zeros((Cpad, G), jnp.float32)
    buf_ref[:, :G] = zg
    buf_ref[:, G + S:] = zg
    buf_ref[:, G:G + S] = x0

    # Hoist the column-wrap mask broadcasts out of the layer loop.
    mk = [None] * K
    for kw in range(K):
        if kw != p:
            mk[kw] = jnp.broadcast_to(m_ref[kw], (Cpad, GW))  # (Cpad, GW)

    # TODO(synk): for large H*W the per-layer matmul should be tiled along the
    # lane (S) axis to bound the `patches` temporary; fine at these sizes.
    for layer in range(1, number_layers + 1):
        xb = buf_ref[...]                                    # (Cpad, GW)

        # Pre-mask the padded activation once per horizontal tap (kw).  The mask
        # pattern expressed on buffer lanes is independent of the vertical tap
        # (kh), so every shifted view below is a pure static slice (no per-piece
        # mask multiply).  Vertical 'same' padding comes from the zero guards.
        xmk = [xb if kw == p else xb * mk[kw] for kw in range(K)]

        pieces = []
        for kh in range(K):
            for kw in range(K):
                off = (kh - p) * W + (kw - p)
                pieces.append(xmk[kw][:, G + off:G + off + S])   # (Cpad, S)
        patches = jnp.concatenate(pieces, axis=0)            # (K*K*Cpad, S)

        y = jnp.dot(w_ref[layer - 1], patches,
                    preferred_element_type=jnp.float32)      # (Cpad, S)
        y = y + b_ref[layer - 1]                             # bias (Cpad,1) bcast

        # dwLayer quirk: the shared kw-dict flips is_last_layer=True at
        # i == number_layers-1 and stays True -> ReLU skipped for the last TWO layers.
        if layer < number_layers - 1:
            y = jnp.maximum(y, 0.0)

        if layer == number_layers:
            # Global residual add (requires Cin == Cout), lane-dense output store.
            o_ref[0] = (y[:Cout] + res[:Cout]).astype(o_ref.dtype)
        else:
            buf_ref[:, G:G + S] = y                          # aligned VMEM store


def dw_forward(x_nchw, params, *, number_layers):
    """dw.forward: fused stack of conv(+relu) layers with a global residual add."""
    # TODO(synk): use_batch_norm=True path (BatchNorm2d with training-mode batch
    # stats) and stride != 1 are not implemented; this config uses
    # use_batch_norm=False, stride=1.
    N, Cin, H, W = x_nchw.shape
    K = params[0][0].shape[0]
    Cout = params[-1][0].shape[3]
    features = params[0][0].shape[3]
    assert Cin == Cout, "global residual add requires in_channels == out_channels"

    S = H * W
    p = K // 2
    G = max(128, _round_up(p * W + p, 128))   # lane-aligned zero guard (>= p*W + p)
    GW = G + S + G
    Cpad = _round_up(max(Cin, Cout, features), 8)
    L = number_layers
    KKC = K * K * Cpad

    # Pack per-layer weights once: (Cout_pad, K*K*Cin_pad), zero channel padding.
    w_list, b_list = [], []
    for (w, b) in params:                 # w: (K, K, cin, cout) HWIO, b: (cout,)
        cin, cout = w.shape[2], w.shape[3]
        wp = jnp.zeros((K, K, Cpad, Cpad), jnp.float32).at[:, :, :cin, :cout].set(w)
        wp = jnp.transpose(wp, (3, 0, 1, 2)).reshape(Cpad, KKC)
        bp = jnp.zeros((Cpad,), jnp.float32).at[:cout].set(b)
        w_list.append(wp)
        b_list.append(bp)
    w_all = jnp.stack(w_list)             # (L, Cpad, KKC)  ~ a few KB total
    b_all = jnp.stack(b_list)[..., None]  # (L, Cpad, 1)

    # Column-validity masks expressed on BUFFER lanes (guard + center + guard).
    # For a horizontal tap offset dw = kw - p, buffer lane l holds the value for
    # output column ((l - G - dw) mod W); valid iff that column + dw is in-range.
    # The pattern is independent of the vertical tap, so one masked copy of the
    # buffer per kw serves all K*K shifted views.
    lanes = jnp.arange(GW, dtype=jnp.int32)
    mlist = []
    for kw in range(K):
        dwd = kw - p
        col = jnp.mod(lanes - G - dwd, W)
        valid = ((col + dwd >= 0) & (col + dwd < W)).astype(jnp.float32)
        mlist.append(valid.reshape(1, GW))
    masks = jnp.stack(mlist)              # (K, 1, GW)

    x_flat = x_nchw.reshape(N, Cin, S)    # NCHW -> flattened NCHW (free reshape)

    kernel = functools.partial(
        _fused_dw_kernel, H=H, W=W, K=K, S=S, G=G,
        Cin=Cin, Cout=Cout, Cpad=Cpad, number_layers=L)

    flops = 0
    for (w, b) in params:
        cin, cout = w.shape[2], w.shape[3]
        flops += 2 * N * S * K * K * cin * cout
    bytes_accessed = 4 * (x_flat.size + w_all.size + b_all.size
                          + masks.size + N * Cout * S)

    out_flat = pl.pallas_call(
        kernel,
        out_shape=jax.ShapeDtypeStruct((N, Cout, S), x_nchw.dtype),
        grid_spec=pltpu.PrefetchScalarGridSpec(
            num_scalar_prefetch=0,
            grid=(N,),
            in_specs=[
                pl.BlockSpec((1, Cin, S), lambda n: (n, 0, 0)),
                pl.BlockSpec((L, Cpad, KKC), lambda n: (0, 0, 0)),
                pl.BlockSpec((L, Cpad, 1), lambda n: (0, 0, 0)),
                pl.BlockSpec((K, 1, GW), lambda n: (0, 0, 0)),
            ],
            out_specs=pl.BlockSpec((1, Cout, S), lambda n: (n, 0, 0)),
            scratch_shapes=[pltpu.VMEM((Cpad, GW), jnp.float32)],
        ),
        compiler_params=pltpu.CompilerParams(
            # v7x: the two TensorCores each take batch elements; no-op on v5e/v6e.
            dimension_semantics=("parallel",)),
        cost_estimate=pl.CostEstimate(flops=flops, transcendentals=0,
                                      bytes_accessed=bytes_accessed),
    )(x_flat, w_all, b_all, masks)

    return out_flat.reshape(N, Cout, H, W)


def init_dw_params(key, *, number_layers, in_channels, features, out_channels,
                   kernel_size):
    """Replicates dw.process_kwdictionary's weights_size layout.

    init_method='xavier' in the module is a no-op (keeps PyTorch's default
    Conv2d init), so we use a deterministic uniform(-1/sqrt(fan_in), +) init.
    """
    weights_size = {i: (features, features, kernel_size)
                    for i in range(2, number_layers)}
    weights_size[1] = (in_channels, features, kernel_size)
    weights_size[number_layers] = (features, out_channels, kernel_size)

    params = []
    for i in range(1, number_layers + 1):
        cin, cout, k = weights_size[i]
        key, wk, bk = jax.random.split(key, 3)
        fan_in = cin * k * k
        bound = 1.0 / (fan_in ** 0.5)
        w = jax.random.uniform(wk, (k, k, cin, cout), jnp.float32, -bound, bound)
        b = jax.random.uniform(bk, (cout,), jnp.float32, -bound, bound)
        params.append((w, b))
    return params


def dw_reference(x_nchw, params, *, number_layers):
    """Pure-JAX reference (lax.conv) for correctness checking."""
    x = jnp.transpose(x_nchw, (0, 2, 3, 1))
    residual = x
    for i, (w, b) in enumerate(params, start=1):
        y = lax.conv_general_dilated(
            x, w, window_strides=(1, 1), padding="SAME",
            dimension_numbers=("NHWC", "HWIO", "NHWC")) + b
        if i < number_layers - 1:
            y = jnp.maximum(y, 0.0)
        x = y
    return jnp.transpose(x + residual, (0, 3, 1, 2))


if __name__ == "__main__":
    # Config (kw_dictionary equivalent): residual add requires in_channels == out_channels.
    number_layers = 4
    in_channels = 4
    out_channels = 4
    features = 8
    kernel_size = 3
    N, H, W = 2, 16, 16

    key = jax.random.PRNGKey(0)
    key, xkey = jax.random.split(key)
    x = jax.random.normal(xkey, (N, in_channels, H, W), jnp.float32)  # NCHW

    params = init_dw_params(key, number_layers=number_layers,
                            in_channels=in_channels, features=features,
                            out_channels=out_channels, kernel_size=kernel_size)

    out = jax.block_until_ready(dw_forward(x, params, number_layers=number_layers))
    ref = jax.block_until_ready(dw_reference(x, params, number_layers=number_layers))

    assert out.shape == (N, out_channels, H, W), out.shape
    assert jnp.allclose(out, ref, atol=2e-4, rtol=2e-4), \
        float(jnp.max(jnp.abs(out - ref)))

    print("KERNEL_OK")
</pallas_src>

<mosaic_0001>
module attributes {stable_mosaic.version = 11 : i64} {
  func.func @_fused_dw_kernel(%arg0: i32, %arg1: memref<1x4x256xf32, #tpu.memory_space<vmem>>, %arg2: memref<4x8x72xf32, #tpu.memory_space<vmem>>, %arg3: memref<4x8x1xf32, #tpu.memory_space<vmem>>, %arg4: memref<3x1x512xf32, #tpu.memory_space<vmem>>, %arg5: memref<1x4x256xf32, #tpu.memory_space<vmem>>, %arg6: memref<8x512xf32, #tpu.memory_space<vmem>>) attributes {dimension_semantics = [#tpu.dimension_semantics<parallel>], iteration_bounds = array<i64: 2>, scalar_prefetch = 0 : i64, scratch_operands = 1 : i64, tpu.core_type = #tpu.core_type<tc>, window_params = [{transform_indices = @transform_0, window_bounds = array<i64: 1, 4, 256>}, {pipeline_mode = #tpu.pipeline_mode<synchronous>, transform_indices = @transform_1, window_bounds = array<i64: 4, 8, 72>}, {pipeline_mode = #tpu.pipeline_mode<synchronous>, transform_indices = @transform_2, window_bounds = array<i64: 4, 8, 1>}, {pipeline_mode = #tpu.pipeline_mode<synchronous>, transform_indices = @transform_3, window_bounds = array<i64: 3, 1, 512>}, {transform_indices = @transform_4, window_bounds = array<i64: 1, 4, 256>}]} {
    %c0 = arith.constant 0 : index
    %c0_0 = arith.constant 0 : index
    %c0_1 = arith.constant 0 : index
    %0 = vector.load %arg1[%c0, %c0_0, %c0_1] : memref<1x4x256xf32, #tpu.memory_space<vmem>>, vector<1x4x256xf32>
    %1 = vector.shape_cast %0 : vector<1x4x256xf32> to vector<4x256xf32>
    %cst = arith.constant 0.000000e+00 : f32
    %2 = vector.broadcast %cst : f32 to vector<4x256xf32>
    %3 = tpu.concatenate %1, %2 in 0 : vector<4x256xf32>, vector<4x256xf32> -> vector<8x256xf32>
    %cst_2 = arith.constant 0.000000e+00 : f32
    %4 = vector.broadcast %cst_2 : f32 to vector<8x128xf32>
    %c0_3 = arith.constant 0 : index
    %c0_4 = arith.constant 0 : index
    %5 = vector.load %arg6[%c0_3, %c0_4] : memref<8x512xf32, #tpu.memory_space<vmem>>, vector<8x128xf32>
    tpu.vector_store %arg6[%c0_3, %c0_4], %4 {strides = array<i32>} : memref<8x512xf32, #tpu.memory_space<vmem>>, vector<8x128xf32>,
    %c0_5 = arith.constant 0 : index
    %c384 = arith.constant 384 : index
    %6 = vector.load %arg6[%c0_5, %c384] : memref<8x512xf32, #tpu.memory_space<vmem>>, vector<8x128xf32>
    tpu.vector_store %arg6[%c0_5, %c384], %4 {strides = array<i32>} : memref<8x512xf32, #tpu.memory_space<vmem>>, vector<8x128xf32>,
    %c0_6 = arith.constant 0 : index
    %c128 = arith.constant 128 : index
    %7 = vector.load %arg6[%c0_6, %c128] : memref<8x512xf32, #tpu.memory_space<vmem>>, vector<8x256xf32>
    tpu.vector_store %arg6[%c0_6, %c128], %3 {strides = array<i32>} : memref<8x512xf32, #tpu.memory_space<vmem>>, vector<8x256xf32>,
    %c0_7 = arith.constant 0 : index
    %c0_8 = arith.constant 0 : index
    %c0_9 = arith.constant 0 : index
    %8 = vector.load %arg4[%c0_7, %c0_8, %c0_9] : memref<3x1x512xf32, #tpu.memory_space<vmem>>, vector<1x1x512xf32>
    %9 = vector.shape_cast %8 : vector<1x1x512xf32> to vector<1x512xf32>
    %10 = vector.shape_cast %9 : vector<1x512xf32> to vector<1x512xf32>
    %11 = vector.broadcast %10 : vector<1x512xf32> to vector<8x512xf32>
    %c2 = arith.constant 2 : index
    %c0_10 = arith.constant 0 : index
    %c0_11 = arith.constant 0 : index
    %12 = vector.load %arg4[%c2, %c0_10, %c0_11] : memref<3x1x512xf32, #tpu.memory_space<vmem>>, vector<1x1x512xf32>
    %13 = vector.shape_cast %12 : vector<1x1x512xf32> to vector<1x512xf32>
    %14 = vector.shape_cast %13 : vector<1x512xf32> to vector<1x512xf32>
    %15 = vector.broadcast %14 : vector<1x512xf32> to vector<8x512xf32>
    %c0_12 = arith.constant 0 : index
    %c0_13 = arith.constant 0 : index
    %16 = vector.load %arg6[%c0_12, %c0_13] : memref<8x512xf32, #tpu.memory_space<vmem>>, vector<8x512xf32>
    %17 = arith.mulf %16, %11 : vector<8x512xf32>
    %18 = arith.mulf %16, %15 : vector<8x512xf32>
    %19 = vector.extract_strided_slice %17 {offsets = [0, 111], sizes = [8, 256], strides = [1, 1]} : vector<8x512xf32> to vector<8x256xf32>
    %20 = vector.extract_strided_slice %16 {offsets = [0, 112], sizes = [8, 256], strides = [1, 1]} : vector<8x512xf32> to vector<8x256xf32>
    %21 = vector.extract_strided_slice %18 {offsets = [0, 113], sizes = [8, 256], strides = [1, 1]} : vector<8x512xf32> to vector<8x256xf32>
    %22 = vector.extract_strided_slice %17 {offsets = [0, 127], sizes = [8, 256], strides = [1, 1]} : vector<8x512xf32> to vector<8x256xf32>
    %23 = vector.extract_strided_slice %16 {offsets = [0, 128], sizes = [8, 256], strides = [1, 1]} : vector<8x512xf32> to vector<8x256xf32>
    %24 = vector.extract_strided_slice %18 {offsets = [0, 129], sizes = [8, 256], strides = [1, 1]} : vector<8x512xf32> to vector<8x256xf32>
    %25 = vector.extract_strided_slice %17 {offsets = [0, 143], sizes = [8, 256], strides = [1, 1]} : vector<8x512xf32> to vector<8x256xf32>
    %26 = vector.extract_strided_slice %16 {offsets = [0, 144], sizes = [8, 256], strides = [1, 1]} : vector<8x512xf32> to vector<8x256xf32>
    %27 = vector.extract_strided_slice %18 {offsets = [0, 145], sizes = [8, 256], strides = [1, 1]} : vector<8x512xf32> to vector<8x256xf32>
    %28 = tpu.concatenate %19, %20, %21, %22, %23, %24, %25, %26, %27 in 0 : vector<8x256xf32>, vector<8x256xf32>, vector<8x256xf32>, vector<8x256xf32>, vector<8x256xf32>, vector<8x256xf32>, vector<8x256xf32>, vector<8x256xf32>, vector<8x256xf32> -> vector<72x256xf32>
    %c0_14 = arith.constant 0 : index
    %c0_15 = arith.constant 0 : index
    %c0_16 = arith.constant 0 : index
    %29 = vector.load %arg2[%c0_14, %c0_15, %c0_16] : memref<4x8x72xf32, #tpu.memory_space<vmem>>, vector<1x8x72xf32>
    %30 = vector.shape_cast %29 : vector<1x8x72xf32> to vector<8x72xf32>
    %cst_17 = arith.constant dense<0.000000e+00> : vector<8x256xf32>
    %31 = tpu.matmul %30, %28, %cst_17 {dimension_numbers = #tpu.dot_dimension_numbers<[1], [0], [0], [1], [0, 0, 1, 1], [], []>} : vector<8x72xf32>, vector<72x256xf32>, vector<8x256xf32> -> vector<8x256xf32>
    %c0_18 = arith.constant 0 : index
    %c0_19 = arith.constant 0 : index
    %c0_20 = arith.constant 0 : index
    %32 = vector.load %arg3[%c0_18, %c0_19, %c0_20] : memref<4x8x1xf32, #tpu.memory_space<vmem>>, vector<1x8x1xf32>
    %33 = vector.shape_cast %32 : vector<1x8x1xf32> to vector<8x1xf32>
    %34 = vector.broadcast %33 : vector<8x1xf32> to vector<8x256xf32>
    %35 = arith.addf %31, %34 : vector<8x256xf32>
    %cst_21 = arith.constant 0.000000e+00 : f32
    %36 = vector.broadcast %cst_21 : f32 to vector<8x256xf32>
    %37 = arith.maximumf %35, %36 : vector<8x256xf32>
    %c0_22 = arith.constant 0 : index
    %c128_23 = arith.constant 128 : index
    %38 = vector.load %arg6[%c0_22, %c128_23] : memref<8x512xf32, #tpu.memory_space<vmem>>, vector<8x256xf32>
    tpu.vector_store %arg6[%c0_22, %c128_23], %37 {strides = array<i32>} : memref<8x512xf32, #tpu.memory_space<vmem>>, vector<8x256xf32>,
    %c0_24 = arith.constant 0 : index
    %c0_25 = arith.constant 0 : index
    %39 = vector.load %arg6[%c0_24, %c0_25] : memref<8x512xf32, #tpu.memory_space<vmem>>, vector<8x512xf32>
    %40 = arith.mulf %39, %11 : vector<8x512xf32>
    %41 = arith.mulf %39, %15 : vector<8x512xf32>
    %42 = vector.extract_strided_slice %40 {offsets = [0, 111], sizes = [8, 256], strides = [1, 1]} : vector<8x512xf32> to vector<8x256xf32>
    %43 = vector.extract_strided_slice %39 {offsets = [0, 112], sizes = [8, 256], strides = [1, 1]} : vector<8x512xf32> to vector<8x256xf32>
    %44 = vector.extract_strided_slice %41 {offsets = [0, 113], sizes = [8, 256], strides = [1, 1]} : vector<8x512xf32> to vector<8x256xf32>
    %45 = vector.extract_strided_slice %40 {offsets = [0, 127], sizes = [8, 256], strides = [1, 1]} : vector<8x512xf32> to vector<8x256xf32>
    %46 = vector.extract_strided_slice %39 {offsets = [0, 128], sizes = [8, 256], strides = [1, 1]} : vector<8x512xf32> to vector<8x256xf32>
    %47 = vector.extract_strided_slice %41 {offsets = [0, 129], sizes = [8, 256], strides = [1, 1]} : vector<8x512xf32> to vector<8x256xf32>
    %48 = vector.extract_strided_slice %40 {offsets = [0, 143], sizes = [8, 256], strides = [1, 1]} : vector<8x512xf32> to vector<8x256xf32>
    %49 = vector.extract_strided_slice %39 {offsets = [0, 144], sizes = [8, 256], strides = [1, 1]} : vector<8x512xf32> to vector<8x256xf32>
    %50 = vector.extract_strided_slice %41 {offsets = [0, 145], sizes = [8, 256], strides = [1, 1]} : vector<8x512xf32> to vector<8x256xf32>
    %51 = tpu.concatenate %42, %43, %44, %45, %46, %47, %48, %49, %50 in 0 : vector<8x256xf32>, vector<8x256xf32>, vector<8x256xf32>, vector<8x256xf32>, vector<8x256xf32>, vector<8x256xf32>, vector<8x256xf32>, vector<8x256xf32>, vector<8x256xf32> -> vector<72x256xf32>
    %c1 = arith.constant 1 : index
    %c0_26 = arith.constant 0 : index
    %c0_27 = arith.constant 0 : index
    %52 = vector.load %arg2[%c1, %c0_26, %c0_27] : memref<4x8x72xf32, #tpu.memory_space<vmem>>, vector<1x8x72xf32>
    %53 = vector.shape_cast %52 : vector<1x8x72xf32> to vector<8x72xf32>
    %cst_28 = arith.constant dense<0.000000e+00> : vector<8x256xf32>
    %54 = tpu.matmul %53, %51, %cst_28 {dimension_numbers = #tpu.dot_dimension_numbers<[1], [0], [0], [1], [0, 0, 1, 1], [], []>} : vector<8x72xf32>, vector<72x256xf32>, vector<8x256xf32> -> vector<8x256xf32>
    %c1_29 = arith.constant 1 : index
    %c0_30 = arith.constant 0 : index
    %c0_31 = arith.constant 0 : index
    %55 = vector.load %arg3[%c1_29, %c0_30, %c0_31] : memref<4x8x1xf32, #tpu.memory_space<vmem>>, vector<1x8x1xf32>
    %56 = vector.shape_cast %55 : vector<1x8x1xf32> to vector<8x1xf32>
    %57 = vector.broadcast %56 : vector<8x1xf32> to vector<8x256xf32>
    %58 = arith.addf %54, %57 : vector<8x256xf32>
    %cst_32 = arith.constant 0.000000e+00 : f32
    %59 = vector.broadcast %cst_32 : f32 to vector<8x256xf32>
    %60 = arith.maximumf %58, %59 : vector<8x256xf32>
    %c0_33 = arith.constant 0 : index
    %c128_34 = arith.constant 128 : index
    %61 = vector.load %arg6[%c0_33, %c128_34] : memref<8x512xf32, #tpu.memory_space<vmem>>, vector<8x256xf32>
    tpu.vector_store %arg6[%c0_33, %c128_34], %60 {strides = array<i32>} : memref<8x512xf32, #tpu.memory_space<vmem>>, vector<8x256xf32>,
    %c0_35 = arith.constant 0 : index
    %c0_36 = arith.constant 0 : index
    %62 = vector.load %arg6[%c0_35, %c0_36] : memref<8x512xf32, #tpu.memory_space<vmem>>, vector<8x512xf32>
    %63 = arith.mulf %62, %11 : vector<8x512xf32>
    %64 = arith.mulf %62, %15 : vector<8x512xf32>
    %65 = vector.extract_strided_slice %63 {offsets = [0, 111], sizes = [8, 256], strides = [1, 1]} : vector<8x512xf32> to vector<8x256xf32>
    %66 = vector.extract_strided_slice %62 {offsets = [0, 112], sizes = [8, 256], strides = [1, 1]} : vector<8x512xf32> to vector<8x256xf32>
    %67 = vector.extract_strided_slice %64 {offsets = [0, 113], sizes = [8, 256], strides = [1, 1]} : vector<8x512xf32> to vector<8x256xf32>
    %68 = vector.extract_strided_slice %63 {offsets = [0, 127], sizes = [8, 256], strides = [1, 1]} : vector<8x512xf32> to vector<8x256xf32>
    %69 = vector.extract_strided_slice %62 {offsets = [0, 128], sizes = [8, 256], strides = [1, 1]} : vector<8x512xf32> to vector<8x256xf32>
    %70 = vector.extract_strided_slice %64 {offsets = [0, 129], sizes = [8, 256], strides = [1, 1]} : vector<8x512xf32> to vector<8x256xf32>
    %71 = vector.extract_strided_slice %63 {offsets = [0, 143], sizes = [8, 256], strides = [1, 1]} : vector<8x512xf32> to vector<8x256xf32>
    %72 = vector.extract_strided_slice %62 {offsets = [0, 144], sizes = [8, 256], strides = [1, 1]} : vector<8x512xf32> to vector<8x256xf32>
    %73 = vector.extract_strided_slice %64 {offsets = [0, 145], sizes = [8, 256], strides = [1, 1]} : vector<8x512xf32> to vector<8x256xf32>
    %74 = tpu.concatenate %65, %66, %67, %68, %69, %70, %71, %72, %73 in 0 : vector<8x256xf32>, vector<8x256xf32>, vector<8x256xf32>, vector<8x256xf32>, vector<8x256xf32>, vector<8x256xf32>, vector<8x256xf32>, vector<8x256xf32>, vector<8x256xf32> -> vector<72x256xf32>
    %c2_37 = arith.constant 2 : index
    %c0_38 = arith.constant 0 : index
    %c0_39 = arith.constant 0 : index
    %75 = vector.load %arg2[%c2_37, %c0_38, %c0_39] : memref<4x8x72xf32, #tpu.memory_space<vmem>>, vector<1x8x72xf32>
    %76 = vector.shape_cast %75 : vector<1x8x72xf32> to vector<8x72xf32>
    %cst_40 = arith.constant dense<0.000000e+00> : vector<8x256xf32>
    %77 = tpu.matmul %76, %74, %cst_40 {dimension_numbers = #tpu.dot_dimension_numbers<[1], [0], [0], [1], [0, 0, 1, 1], [], []>} : vector<8x72xf32>, vector<72x256xf32>, vector<8x256xf32> -> vector<8x256xf32>
    %c2_41 = arith.constant 2 : index
    %c0_42 = arith.constant 0 : index
    %c0_43 = arith.constant 0 : index
    %78 = vector.load %arg3[%c2_41, %c0_42, %c0_43] : memref<4x8x1xf32, #tpu.memory_space<vmem>>, vector<1x8x1xf32>
    %79 = vector.shape_cast %78 : vector<1x8x1xf32> to vector<8x1xf32>
    %80 = vector.broadcast %79 : vector<8x1xf32> to vector<8x256xf32>
    %81 = arith.addf %77, %80 : vector<8x256xf32>
    %c0_44 = arith.constant 0 : index
    %c128_45 = arith.constant 128 : index
    %82 = vector.load %arg6[%c0_44, %c128_45] : memref<8x512xf32, #tpu.memory_space<vmem>>, vector<8x256xf32>
    tpu.vector_store %arg6[%c0_44, %c128_45], %81 {strides = array<i32>} : memref<8x512xf32, #tpu.memory_space<vmem>>, vector<8x256xf32>,
    %c0_46 = arith.constant 0 : index
    %c0_47 = arith.constant 0 : index
    %83 = vector.load %arg6[%c0_46, %c0_47] : memref<8x512xf32, #tpu.memory_space<vmem>>, vector<8x512xf32>
    %84 = arith.mulf %83, %11 : vector<8x512xf32>
    %85 = arith.mulf %83, %15 : vector<8x512xf32>
    %86 = vector.extract_strided_slice %84 {offsets = [0, 111], sizes = [8, 256], strides = [1, 1]} : vector<8x512xf32> to vector<8x256xf32>
    %87 = vector.extract_strided_slice %83 {offsets = [0, 112], sizes = [8, 256], strides = [1, 1]} : vector<8x512xf32> to vector<8x256xf32>
    %88 = vector.extract_strided_slice %85 {offsets = [0, 113], sizes = [8, 256], strides = [1, 1]} : vector<8x512xf32> to vector<8x256xf32>
    %89 = vector.extract_strided_slice %84 {offsets = [0, 127], sizes = [8, 256], strides = [1, 1]} : vector<8x512xf32> to vector<8x256xf32>
    %90 = vector.extract_strided_slice %83 {offsets = [0, 128], sizes = [8, 256], strides = [1, 1]} : vector<8x512xf32> to vector<8x256xf32>
    %91 = vector.extract_strided_slice %85 {offsets = [0, 129], sizes = [8, 256], strides = [1, 1]} : vector<8x512xf32> to vector<8x256xf32>
    %92 = vector.extract_strided_slice %84 {offsets = [0, 143], sizes = [8, 256], strides = [1, 1]} : vector<8x512xf32> to vector<8x256xf32>
    %93 = vector.extract_strided_slice %83 {offsets = [0, 144], sizes = [8, 256], strides = [1, 1]} : vector<8x512xf32> to vector<8x256xf32>
    %94 = vector.extract_strided_slice %85 {offsets = [0, 145], sizes = [8, 256], strides = [1, 1]} : vector<8x512xf32> to vector<8x256xf32>
    %95 = tpu.concatenate %86, %87, %88, %89, %90, %91, %92, %93, %94 in 0 : vector<8x256xf32>, vector<8x256xf32>, vector<8x256xf32>, vector<8x256xf32>, vector<8x256xf32>, vector<8x256xf32>, vector<8x256xf32>, vector<8x256xf32>, vector<8x256xf32> -> vector<72x256xf32>
    %c3 = arith.constant 3 : index
    %c0_48 = arith.constant 0 : index
    %c0_49 = arith.constant 0 : index
    %96 = vector.load %arg2[%c3, %c0_48, %c0_49] : memref<4x8x72xf32, #tpu.memory_space<vmem>>, vector<1x8x72xf32>
    %97 = vector.shape_cast %96 : vector<1x8x72xf32> to vector<8x72xf32>
    %cst_50 = arith.constant dense<0.000000e+00> : vector<8x256xf32>
    %98 = tpu.matmul %97, %95, %cst_50 {dimension_numbers = #tpu.dot_dimension_numbers<[1], [0], [0], [1], [0, 0, 1, 1], [], []>} : vector<8x72xf32>, vector<72x256xf32>, vector<8x256xf32> -> vector<8x256xf32>
    %c3_51 = arith.constant 3 : index
    %c0_52 = arith.constant 0 : index
    %c0_53 = arith.constant 0 : index
    %99 = vector.load %arg3[%c3_51, %c0_52, %c0_53] : memref<4x8x1xf32, #tpu.memory_space<vmem>>, vector<1x8x1xf32>
    %100 = vector.shape_cast %99 : vector<1x8x1xf32> to vector<8x1xf32>
    %101 = vector.broadcast %100 : vector<8x1xf32> to vector<8x256xf32>
    %102 = arith.addf %98, %101 : vector<8x256xf32>
    %103 = vector.extract_strided_slice %102 {offsets = [0, 0], sizes = [4, 256], strides = [1, 1]} : vector<8x256xf32> to vector<4x256xf32>
    %104 = arith.addf %103, %1 : vector<4x256xf32>
    %c0_54 = arith.constant 0 : index
    %c0_55 = arith.constant 0 : index
    %c0_56 = arith.constant 0 : index
    %105 = vector.load %arg5[%c0_54, %c0_55, %c0_56] : memref<1x4x256xf32, #tpu.memory_space<vmem>>, vector<1x4x256xf32>
    %106 = vector.shape_cast %105 : vector<1x4x256xf32> to vector<4x256xf32>
    %107 = vector.shape_cast %104 : vector<4x256xf32> to vector<1x4x256xf32>
    tpu.vector_store %arg5[%c0_54, %c0_55, %c0_56], %107 {strides = array<i32>} : memref<1x4x256xf32, #tpu.memory_space<vmem>>, vector<1x4x256xf32>,
    return
  }
  func.func @transform_0(%arg0: i32) -> (i32, i32, i32) {
    %c0_i32 = arith.constant 0 : i32
    %c0_i32_0 = arith.constant 0 : i32
    %c0_i32_1 = arith.constant 0 : i32
    return %arg0, %c0_i32, %c0_i32_0 : i32, i32, i32
  }
  func.func @transform_1(%arg0: i32) -> (i32, i32, i32) {
    %c0_i32 = arith.constant 0 : i32
    %c0_i32_0 = arith.constant 0 : i32
    %c0_i32_1 = arith.constant 0 : i32
    %c0_i32_2 = arith.constant 0 : i32
    return %c0_i32, %c0_i32_0, %c0_i32_1 : i32, i32, i32
  }
  func.func @transform_2(%arg0: i32) -> (i32, i32, i32) {
    %c0_i32 = arith.constant 0 : i32
    %c0_i32_0 = arith.constant 0 : i32
    %c0_i32_1 = arith.constant 0 : i32
    %c0_i32_2 = arith.constant 0 : i32
    return %c0_i32, %c0_i32_0, %c0_i32_1 : i32, i32, i32
  }
  func.func @transform_3(%arg0: i32) -> (i32, i32, i32) {
    %c0_i32 = arith.constant 0 : i32
    %c0_i32_0 = arith.constant 0 : i32
    %c0_i32_1 = arith.constant 0 : i32
    %c0_i32_2 = arith.constant 0 : i32
    return %c0_i32, %c0_i32_0, %c0_i32_1 : i32, i32, i32
  }
  func.func @transform_4(%arg0: i32) -> (i32, i32, i32) {
    %c0_i32 = arith.constant 0 : i32
    %c0_i32_0 = arith.constant 0 : i32
    %c0_i32_1 = arith.constant 0 : i32
    return %arg0, %c0_i32, %c0_i32_0 : i32, i32, i32
  }
}

</mosaic_0001>

<bundles_post_ra>
// kernel: tpu_custom_call.1
= control target key start
LH: loop header
LB: loop body
LE: loop exit
PB: predicated region body
PF: predicated region fallthrough
CT: control target
= control target key end

     0   :  { %9 = vsyncpa [#allocation4], 0  ;;  %s2338_s0 = inlined_call_operand.hbm [shape: f32[2,4,256], index: 0, kind: input, shape index: {}]   ;;  %s2339_s1 = inlined_call_operand.vmem [shape: f32[4,8,72], index: 1, kind: input, shape index: {}]   ;;  %s2340_s2 = inlined_call_operand.vmem [shape: f32[4,8,1], index: 2, kind: input, shape index: {}]   ;;  %s2341_s3 = inlined_call_operand.hbm [shape: f32[3,1,512], index: 3, kind: input, shape index: {}]   ;;  %s2342_s4 = inlined_call_operand.hbm [shape: f32[2,4,256], index: 4, kind: output, shape index: {}]  }
   0x1   :  { %11 = vsyncpa [#allocation4 + $0x1], 0 }
   0x2   :  { %12 = vsyncpa [#allocation7], 0 }
   0x3   :  { %13 = vsyncpa [#allocation5], 0 }
   0x4   :  { %15 = vsyncpa [#allocation5 + $0x1], 0  ;;  %s1704_s15 = smov 0   ;;  %s1706_s16 = smov 0  }
   0x5   :  { %s1708_s17 = smov 0   ;;  %s1710_s18 = smov 0  }
   0x6 LB: > { %s1725_s19 = sadd.s32 4294967295, %s1661_s18   ;;  %s1437_s20 = sadd.s32 4294967294, %s1661_s18   ;;  %s1661_s18 = sphi %s1710_s18, %s2364_s18   ;;  %s1657_s17 = sphi %s1708_s17, %s2363_s17   ;;  %s1653_s16 = sphi %s1706_s16, %s2362_s16   ;;  %s1649_s15 = sphi %s1704_s15, %s2361_s15  }
   0x7   : > { %p41_p0 = scmp.ne.s32.totalorder %s1653_s16, %s1649_s15  ;;  %p2343_p1 = scmp.eq.s32.totalorder %s1725_s19, 0 }
   0x8   : > { %p134_p3 = scmp.eq.s32.totalorder %s1437_s20, 1  ;;  %p1438_p5 = scmp.ge.s32.totalorder %s1661_s18, 1 }
   0x9   : > { %p1734_p4 = por %p2343_p1, %p41_p0  ;;  %p141_p7 = scmp.lt.s32.totalorder %s1661_s18, 3 }
   0xa   : > { %p1739_p6 = por %p134_p3, %p41_p0  ;;  %s1663_s24 = smov [#allocation6]  }
   0xb   : > { %s2347_s21 = scalar_select %p1734_p4, 1, 0 }
   0xc   : > { %s2348_s22 = scalar_select %p1739_p6, 1, 0 }
   0xd   : > { %p1744_p8 = pnand %p1438_p5, %p141_p7  ;;  %s159_s25 = sshll.u32 %s1663_s24, 4  ;;  %s160_s25 = int_to_ptr.vmem [resolvable:$true] %s159_s25 }
   0xe   : > { %s1758_s27 = sadd.s32 1, %s1661_s18   ;;  %s28_s28 = sadd.s32 1, %s1657_s17 }
   0xf   : > { %s2349_s23 = scalar_select %p1744_p8, 1, 0 }
  0x10   : > { %p1473_p9 = pneg %p1744_p8  ;;  %s25_s29 = ssub.s32 %s1661_s18, %s1758_s27 }
  0x11   : > { %s1550_s30 = scalar_lea.vmem %s160_s25, 192  ;;  %p1558_p5 = scmp.lt.s32.totalorder %s160_s25, %s160_s25 }
  0x12   : > { %p1753_p11 = pnand %p1473_p9, %p2343_p1  ;;  %p1551_p13 = scmp.ne.s32.totalorder %s160_s25, %s1550_s30 }
  0x13   : > { %p1559_p7 = scmp.lt.s32.totalorder %s1550_s30, %s1550_s30 }
  0x14   : > { %p1541_p12 = pneg %p1753_p11 }
  0x15   : > { %p1560_p10 = por %p1559_p7, %p1558_p5 }
  0x16   : > { %p1553_p0 = pnand %p1551_p13, %p1541_p12 }
  0x18   : > { %p1554_p3 = pneg %p1553_p0 }
  0x1a   : > { %p1561_p2 = pnand %p1560_p10, %p1554_p3 }
  0x1c   : > { %1564 = shalt.err (!%p1561_p2)
}
  0x1d   : > { %s1664_s5 = smov 64   ;;  %s1665_s6 = smov 4  }
  0x1e   : > { %1476 = dma.hbm_to_vmem [thread:$0]  (!%p1753_p11), %s2341_s3, 192, %s160_s25, [#allocation7], %s1664_s5, %s1664_s5, %s1665_s6  }
  0x1f   : > { %p26_p9 = scmp.eq.s32.totalorder %s25_s29, 0  ;;  %p35_p12 = scmp.ne.s32.totalorder %s1657_s17, %s1653_s16 }
  0x20   : > { %p36_p10 = scmp.eq.s32.totalorder %s1661_s18, 0  ;;  %p1486_p2 = scmp.lt.s32.totalorder %s1661_s18, 2 }
  0x21   : > { %s1775_s9 = scalar_select %p26_p9, %s1657_s17, %s28_s28  }
  0x22   : > { %p37_p13 = por %p36_p10, %p35_p12  ;;  %p2351_p0 = scmp.eq.s32.totalorder %s1725_s19, 1 }
  0x23   : > { %s173_s11 = sand.u32 1, %s1657_s17   ;;  %s1463_s12 = sshll.u32 %s1661_s18, 7 }
  0x24   : > { %p1779_p3 = por %p2351_p0, %p35_p12  ;;  %s1441_s13 = sshll.u32 %s173_s11, 3 }
  0x25   : > { %s1788_s24 = scalar_lea.hbm %s2338_s0, %s1463_s12  ;;  %s177_s25 = scalar_lea.vmem [#allocation3], %s1441_s13 }
  0x26   : > { %s2352_s10 = scalar_select %p1779_p3, 1, 0 }
  0x27   : > { %s185_s26 = sshll.u32 %s177_s25, 4  ;;  %p1790_p11 = pnand %p1486_p2, %p37_p13  ;;  %s186_s26 = int_to_ptr.vmem [resolvable:$true] %s185_s26 }
  0x28   : > { %s174_s29 = scalar_lea.sflag [#allocation4], %s173_s11  ;;  %s1565_s30 = scalar_lea.hbm %s1788_s24, 128 }
  0x29   : > { %p1566_p5 = scmp.ne.s32.totalorder %s1788_s24, %s1565_s30  ;;  %p1567_p7 = pneg %p1790_p11 }
  0x2a   : > { %s1570_s7 = scalar_lea.hbm %s2338_s0, 256  ;;  %p1571_p10 = scmp.lt.s32.totalorder %s1788_s24, %s2338_s0 }
  0x2b   : > { %p1568_p9 = pnand %p1567_p7, %p1566_p5  ;;  %p1572_p2 = scmp.lt.s32.totalorder %s1570_s7, %s1565_s30 }
  0x2d   : > { %p1569_p12 = pneg %p1568_p9  ;;  %p1573_p13 = por %p1572_p2, %p1571_p10 }
  0x2f   : > { %p1574_p0 = pnand %p1573_p13, %p1569_p12 }
  0x31   : > { %1577 = shalt.err (!%p1574_p0)
}
  0x32   : > { %s1578_s13 = scalar_lea.vmem %s186_s26, 128  ;;  %s1666_s11 = smov [#allocation3]  }
  0x33   : > { %p1579_p1 = scmp.ne.s32.totalorder %s186_s26, %s1578_s13  ;;  %s1583_s14 = sshll.u32 %s1666_s11, 4  ;;  %s1584_s14 = int_to_ptr.vmem [resolvable:$false] %s1583_s14 }
  0x34   : > { %s1585_s20 = scalar_lea.vmem %s1584_s14, 256  ;;  %p1586_p5 = scmp.lt.s32.totalorder %s186_s26, %s1584_s14 }
  0x35   : > { %p1581_p6 = pnand %p1579_p1, %p1567_p7  ;;  %p1587_p9 = scmp.lt.s32.totalorder %s1585_s20, %s1578_s13 }
  0x37   : > { %p1582_p3 = pneg %p1581_p6  ;;  %p1588_p4 = por %p1587_p9, %p1586_p5 }
  0x39   : > { %p1589_p8 = pnand %p1588_p4, %p1582_p3 }
  0x3b   : > { %1592 = shalt.err (!%p1589_p8)
}
  0x3c   : > { %1480 = dma.hbm_to_vmem [thread:$0]  (!%p1790_p11), %s1788_s24, 128, %s186_s26, %s174_s29  }
  0x3d   : > { %p2354_p12 = scmp.ne.s32.totalorder %s2349_s23, 0 }
  0x3e   : > { %s1811_s25 = sand.u32 (!%p2354_p12), 1, %s1653_s16   ;;  %p2355_p1 = scmp.ne.s32.totalorder (!%p2354_p12), %s2347_s21, 0 }
  0x3f   : > { %194 = sbr.rel (%p2354_p12) target bundleno = 2113 (0x841), region = 36  ;;  %s1445_s30 = sshll.u32 (!%p2354_p12), %s1811_s25, 3 }
  0x40   : > { %s197_s5 = scalar_lea.sflag (!%p2354_p12), [#allocation4], %s1811_s25  ;;  %s1817_s6 = scalar_lea.vmem (!%p2354_p12), [#allocation3], %s1445_s30 }
  0x44   : > { %1636 = dma.done.wait (%p2355_p1), %s197_s5, 128  }
  0x45   : > { %1638 = vsyncadd (%p2355_p1), %s197_s5, 4294967168  ;;  %p2356_p4 = scmp.eq.s32.totalorder %s1725_s19, 0 }
  0x47   : > { %1640 = dma.done.wait (%p2356_p4), [#allocation7], 192   ;;  %p2357_p6 = pmov %p2356_p4 }
  0x48   : > { %v242_v0 = vlaneseq  ;;  %v1667_v1 = vmov 0.0   ;;  %s1668_s23 = smov 95   ;;  %vm233_vm0 = vcmask 1043456   ;;  %v229_v6 = vld [vmem:[%s1817_s6] sm:$0xff]  ;;  %v263_v7 = vld [vmem:[#allocation6 + $0x8] sm:$0xf] }
  0x49   : > { %1642 = vsyncadd (%p2357_p6), [#allocation7], 4294967104  ;;  %364 = vrot.lane.b32.xlu1 %v1667_v1, %s1668_s23  ;;  %544 = vmatprep.mubr.f32.mxu0 %v1667_v1  ;;  %v240_v8 = vld [vmem:[#allocation6] sm:$0xf]  ;;  %v234_v9 = vsel %vm233_vm0, %v229_v6, 0.0  ;;  %v1832_v10 = vcombine.high %v229_v6, %v229_v6  ;;  %s1669_s21 = smov 94  }
  0x4a   : > { %v243_v2 = vshrl.u32 %v242_v0, 7  ;;  %806 = vmatprep.mubr.f32.mxu1 %v1667_v1  ;;  %s1670_s24 = smov 96   ;;  %s1671_s26 = smov 110   ;;  %vm366_vm1 = vcmask 777216   ;;  %vm306_vm2 = vcmask 1039360   ;;  %vm330_vm3 = vcmask 916480  }
  0x4b   : > { %v235_v14 = vsel %vm233_vm0, %v1832_v10, 0.0  ;;  %s1672_s28 = smov 111   ;;  %s1673_s29 = smov 112   ;;  %vm337_vm4 = vcmask 908288   ;;  %vm375_vm5 = vcmask 769024   ;;  %vm318_vm6 = vcmask 1031168  }
  0x4c   : > { %v256_v3 = vsub.s32 3, %v243_v2  ;;  %v248_v4 = vsub.s32 1, %v243_v2  ;;  %v252_v5 = vsub.s32 2, %v243_v2  ;;  %362 = vrot.lane.b32.xlu0 %v235_v14, %s1668_s23  ;;  %v244_v24 = vsub.s32 0, %v243_v2  ;;  %s1674_s7 = smov 126   ;;  %s1675_s8 = smov 127  }
  0x4d   : > { %360 = vrot.lane.b32.xlu1 %v234_v9, %s1668_s23  ;;  %s1676_s12 = smov 17   ;;  %vm356_vm7 = vcmask 785408   ;;  %vm346_vm8 = vcmask 900096   ;;  %vm439_vm9 = vcmask 138240   ;;  %vm476_vm10 = vcmask 588800   ;;  %s1343_s20 = scalar_lea.sflag [#allocation5], %s1811_s25 }
  0x4e   : > { %v280_v11 = vrot.slane %v263_v7, %v256_v3  ;;  %v1834_v12 = vrot.slane %v263_v7, %v248_v4  ;;  %v1837_v13 = vrot.slane %v240_v8, %v252_v5  ;;  %v1844_v17 = vrot.slane %v240_v8, %v248_v4  ;;  %p2358_p3 = scmp.ne.s32.totalorder %s2352_s10, 0 }
  0x4f   : > { %v1855_v20 = vrot.slane %v263_v7, %v252_v5  ;;  %v257_v22 = vrot.slane %v240_v8, %v256_v3  ;;  %v268_v25 = vrot.slane %v263_v7, %v244_v24  ;;  %v245_v26 = vrot.slane %v240_v8, %v244_v24  ;;  %v379_v5 = vld [vmem:[%s2340_s2] sm:$0xff] }
  0x50   : > { %v1840_v15 = vmul.f32 0.0, %v280_v11  ;;  %v294_v16 = vmul.f32 %v1834_v12, %v234_v9  ;;  %v1849_v18 = vmul.f32 %v1837_v13, %v235_v14  ;;  %v1853_v19 = vmul.f32 %v1844_v17, %v234_v9 }
  0x51   : > { %v295_v21 = vmul.f32 %v1855_v20, %v235_v14  ;;  %v1864_v23 = vmul.f32 0.0, %v257_v22  ;;  %v1876_v27 = vmul.f32 0.0, %v268_v25  ;;  %v1880_v28 = vmul.f32 0.0, %v245_v26 }
  0x52   : > { %373 = vrot.lane.b32.xlu1 %v1840_v15, %s1669_s21  ;;  %369 = vrot.lane.b32.xlu0 %v294_v16, %s1669_s21  ;;  %v1677_v3 = vmov 0  }
  0x53   : > { %1535 = vset.pattern.permute.xlu0 %v1677_v3  ;;  %1536 = vset.pattern.permute.xlu1 %v1677_v3 }
  0x56   : > { %352 = vrot.lane.b32.xlu1 %v1849_v18, %s1670_s24  ;;  %350 = vrot.lane.b32.xlu0 %v1853_v19, %s1670_s24 }
  0x5a   : > { %340 = vrot.lane.b32.xlu1 %v294_v16, %s1671_s26  ;;  %371 = vrot.lane.b32.xlu0 %v295_v21, %s1669_s21 }
  0x5e   : > { %344 = vrot.lane.b32.xlu1 %v1840_v15, %s1671_s26  ;;  %354 = vrot.lane.b32.xlu0 %v1864_v23, %s1670_s24 }
  0x62   : > { %335 = vrot.lane.b32.xlu1 %v235_v14, %s1672_s28  ;;  %342 = vrot.lane.b32.xlu0 %v295_v21, %s1671_s26 }
  0x66   : > { %328 = vrot.lane.b32.xlu1 %v1849_v18, %s1673_s29  ;;  %333 = vrot.lane.b32.xlu0 %v234_v9, %s1672_s28 }
  0x6a   : > { %314 = vrot.lane.b32.xlu1 %v294_v16, %s1674_s7  ;;  %326 = vrot.lane.b32.xlu0 %v1853_v19, %s1673_s29 }
  0x6e   : > { %312 = vrot.lane.b32.xlu1 %v1876_v27, %s1674_s7  ;;  %324 = vrot.lane.b32.xlu0 %v1880_v28, %s1673_s29 }
  0x72   : > { %304 = vrot.lane.b32.xlu1 %v235_v14, %s1675_s8  ;;  %316 = vrot.lane.b32.xlu0 %v295_v21, %s1674_s7 }
  0x76   : > { %302 = vrot.lane.b32.xlu0 %v234_v9, %s1675_s8 }
  0x7a   : > { %300 = vrot.lane.b32.xlu0 %v1667_v1, %s1675_s8 }
  0xbb   : > { %v365_v29 = vpop.permute.xlu1 %364 }
  0xbe   : > { %v363_v31 = vpop.permute.xlu0 %362 }
  0xbf   : > { %v361_v30 = vpop.permute.xlu1 %360  ;;  %v368_v53 = vsel %vm366_vm1, %v363_v31, %v365_v29 }
  0xc0   : > { %427 = vrot.lane.b32.xlu0 %v361_v30, %s1676_s12  ;;  %v367_v43 = vsel %vm366_vm1, %v361_v30, %v363_v31 }
  0xc4   : > { %v374_v32 = vpop.permute.xlu1 %373  ;;  %v370_v33 = vpop.permute.xlu0 %369 }
  0xc8   : > { %v353_v34 = vpop.permute.xlu1 %352  ;;  %v351_v35 = vpop.permute.xlu0 %350 }
  0xc9   : > { %v357_v63 = vsel %vm356_vm7, %v351_v35, %v353_v34 }
  0xcc   : > { %v341_v36 = vpop.permute.xlu1 %340  ;;  %v372_v37 = vpop.permute.xlu0 %371 }
  0xcd   : > { %v377_v56 = vsel %vm375_vm5, %v372_v37, %v374_v32  ;;  %v376_v60 = vsel %vm375_vm5, %v370_v33, %v372_v37 }
  0xd0   : > { %v345_v38 = vpop.permute.xlu1 %344  ;;  %v355_v39 = vpop.permute.xlu0 %354 }
  0xd1   : > { %v358_v57 = vsel %vm356_vm7, %v353_v34, %v355_v39 }
  0xd4   : > { %v336_v40 = vpop.permute.xlu1 %335  ;;  %v343_v41 = vpop.permute.xlu0 %342 }
  0xd5   : > { %413 = vrot.lane.b32.xlu0 %v336_v40, %s1676_s12  ;;  %v347_v59 = vsel %vm346_vm8, %v341_v36, %v343_v41  ;;  %v348_v2 = vsel %vm346_vm8, %v343_v41, %v345_v38 }
  0xd8   : > { %v329_v42 = vpop.permute.xlu1 %328  ;;  %v334_v44 = vpop.permute.xlu0 %333 }
  0xd9   : > { %429 = vrot.lane.b32.xlu0 %v367_v43, %s1676_s12  ;;  %409 = vrot.lane.b32.xlu1 %v334_v44, %s1676_s12  ;;  %v338_v55 = vsel %vm337_vm4, %v334_v44, %v336_v40 }
  0xdc   : > { %v315_v45 = vpop.permute.xlu1 %314  ;;  %v327_v46 = vpop.permute.xlu0 %326 }
  0xdd   : > { %415 = vrot.lane.b32.xlu0 %v341_v36, %s1676_s12  ;;  %v332_v61 = vsel %vm330_vm3, %v327_v46, %v329_v42 }
  0xe0   : > { %v313_v47 = vpop.permute.xlu1 %312  ;;  %v325_v48 = vpop.permute.xlu0 %324 }
  0xe1   : > { %v331_v54 = vsel %vm330_vm3, %v325_v48, %v327_v46  ;;  %v319_v58 = vsel %vm318_vm6, %v313_v47, %v315_v45 }
  0xe4   : > { %v305_v49 = vpop.permute.xlu1 %304  ;;  %v317_v50 = vpop.permute.xlu0 %316 }
  0xe5   : > { %395 = vrot.lane.b32.xlu1 %v305_v49, %s1676_s12  ;;  %v320_v4 = vsel %vm318_vm6, %v315_v45, %v317_v50 }
  0xe8   : > { %v303_v51 = vpop.permute.xlu0 %302 }
  0xe9   : > { %433 = vrot.lane.b32.xlu1 %v370_v33, %s1676_s12  ;;  %v308_v52 = vsel %vm306_vm2, %v303_v51, %v305_v49 }
  0xea   : > { %393 = vrot.lane.b32.xlu0 %v308_v52, %s1676_s12 }
  0xec   : > { %v301_v62 = vpop.permute.xlu0 %300 }
  0xed   : > { %431 = vrot.lane.b32.xlu1 %v368_v53, %s1676_s12  ;;  %v307_v0 = vsel %vm306_vm2, %v301_v62, %v303_v51 }
  0xee   : > { %403 = vrot.lane.b32.xlu0 %v331_v54, %s1676_s12 }
  0xf1   : > { %421 = vrot.lane.b32.xlu1 %v351_v35, %s1676_s12 }
  0xf2   : > { %401 = vrot.lane.b32.xlu0 %v317_v50, %s1676_s12 }
  0xf5   : > { %411 = vrot.lane.b32.xlu1 %v338_v55, %s1676_s12 }
  0xf6   : > { %437 = vrot.lane.b32.xlu0 %v377_v56, %s1676_s12 }
  0xf9   : > { %407 = vrot.lane.b32.xlu1 %v329_v42, %s1676_s12 }
  0xfa   : > { %425 = vrot.lane.b32.xlu0 %v358_v57, %s1676_s12 }
  0xfd   : > { %397 = vrot.lane.b32.xlu1 %v319_v58, %s1676_s12 }
  0xfe   : > { %417 = vrot.lane.b32.xlu0 %v347_v59, %s1676_s12  ;;  %v378_v59 = vld [vmem:[%s2339_s1] sm:$0xff] }
 0x101   : > { %435 = vrot.lane.b32.xlu1 %v376_v60, %s1676_s12 }
 0x102   : > { %405 = vrot.lane.b32.xlu0 %v332_v61, %s1676_s12 }
 0x105   : > { %423 = vrot.lane.b32.xlu1 %v357_v63, %s1676_s12 }
 0x106   : > { %391 = vrot.lane.b32.xlu0 %v307_v0, %s1676_s12 }
 0x109   : > { %419 = vrot.lane.b32.xlu1 %v348_v2, %s1676_s12 }
 0x10a   : > { %389 = vrot.lane.b32.xlu0 %v1849_v18, %s1676_s12 }
 0x10d   : > { %399 = vrot.lane.b32.xlu1 %v320_v4, %s1676_s12 }
 0x10e   : > { %382 = vperm.xlu0 %1535, %v379_v5  }
 0x111   : > { %387 = vrot.lane.b32.xlu1 %v1853_v19, %s1676_s12 }
 0x112   : > { %636 = vrot.lane.b32.xlu0 %v1840_v15, %s1669_s21 }
 0x115   : > { %385 = vrot.lane.b32.xlu1 %v1880_v28, %s1676_s12 }
 0x116   : > { %619 = vrot.lane.b32.xlu0 %v1864_v23, %s1670_s24 }
 0x119   : > { %628 = vrot.lane.b32.xlu1 %v1667_v1, %s1668_s23 }
 0x11a   : > { %592 = vrot.lane.b32.xlu0 %v1880_v28, %s1673_s29 }
 0x11d   : > { %610 = vrot.lane.b32.xlu1 %v1840_v15, %s1671_s26 }
 0x132   : > { %v428_v6 = vpop.permute.xlu0 %427 }
 0x147   : > { %v414_v7 = vpop.permute.xlu0 %413 }
 0x14b   : > { %v410_v8 = vpop.permute.xlu1 %409  ;;  %v430_v9 = vpop.permute.xlu0 %429 }
 0x14c   : > { %v454_v38 = vsel %vm439_vm9, %v428_v6, %v430_v9 }
 0x14f   : > { %v416_v14 = vpop.permute.xlu0 %415 }
 0x157   : > { %v396_v11 = vpop.permute.xlu1 %395 }
 0x15b   : > { %v434_v16 = vpop.permute.xlu1 %433 }
 0x15c   : > { %v394_v18 = vpop.permute.xlu0 %393 }
 0x15d   : > { %v443_v55 = vsel %vm439_vm9, %v394_v18, %v396_v11 }
 0x15f   : > { %v432_v19 = vpop.permute.xlu1 %431 }
 0x160   : > { %v404_v21 = vpop.permute.xlu0 %403  ;;  %v455_v36 = vsel %vm439_vm9, %v430_v9, %v432_v19 }
 0x163   : > { %v422_v22 = vpop.permute.xlu1 %421 }
 0x164   : > { %v402_v24 = vpop.permute.xlu0 %401 }
 0x167   : > { %v412_v25 = vpop.permute.xlu1 %411 }
 0x168   : > { %v438_v26 = vpop.permute.xlu0 %437  ;;  %v449_v45 = vsel %vm439_vm9, %v412_v25, %v414_v7  ;;  %v448_v48 = vsel %vm439_vm9, %v410_v8, %v412_v25 }
 0x16b   : > { %v408_v29 = vpop.permute.xlu1 %407 }
 0x16c   : > { %v426_v30 = vpop.permute.xlu0 %425 }
 0x16f   : > { %v398_v31 = vpop.permute.xlu1 %397 }
 0x170   : > { %v418_v32 = vpop.permute.xlu0 %417 }
 0x171   : > { %v450_v44 = vsel %vm439_vm9, %v416_v14, %v418_v32 }
 0x173   : > { %v436_v33 = vpop.permute.xlu1 %435 }
 0x174   : > { %v457_v34 = vsel %vm439_vm9, %v436_v33, %v438_v26  ;;  %v456_v35 = vsel %vm439_vm9, %v434_v16, %v436_v33  ;;  %v406_v41 = vpop.permute.xlu0 %405 }
 0x175   : > { %494 = vmatprep.subr.mxu0 %v457_v34  ;;  %v447_v49 = vsel %vm439_vm9, %v406_v41, %v408_v29  ;;  %v446_v50 = vsel %vm439_vm9, %v404_v21, %v406_v41 }
 0x176   : > { %495 = vmatpush1.msra.mxu0 %v456_v35 }
 0x177   : > { %496 = vmatprep.subr.mxu0 %v455_v36  ;;  %v424_v37 = vpop.permute.xlu1 %423 }
 0x178   : > { %497 = vmatpush1.msra.mxu0 %v454_v38  ;;  %v453_v39 = vsel %vm439_vm9, %v424_v37, %v426_v30  ;;  %v452_v40 = vsel %vm439_vm9, %v422_v22, %v424_v37  ;;  %v392_v46 = vpop.permute.xlu0 %391 }
 0x179   : > { %498 = vmatprep.subr.mxu0 %v453_v39  ;;  %v442_v56 = vsel %vm439_vm9, %v392_v46, %v394_v18 }
 0x17a   : > { %499 = vmatpush1.msra.mxu0 %v452_v40 }
 0x17b   : > { %v420_v42 = vpop.permute.xlu1 %419 }
 0x17c   : > { %v451_v43 = vsel %vm439_vm9, %v418_v32, %v420_v42  ;;  %v390_v52 = vpop.permute.xlu0 %389 }
 0x17d   : > { %500 = vmatprep.subr.mxu0 %v451_v43 }
 0x17e   : > { %501 = vmatpush1.msra.mxu0 %v450_v44 }
 0x17f   : > { %502 = vmatprep.subr.mxu0 %v449_v45  ;;  %v400_v47 = vpop.permute.xlu1 %399 }
 0x180   : > { %503 = vmatpush1.msra.mxu0 %v448_v48  ;;  %v445_v51 = vsel %vm439_vm9, %v400_v47, %v402_v24  ;;  %v444_v54 = vsel %vm439_vm9, %v398_v31, %v400_v47 }
 0x181   : > { %504 = vmatprep.subr.mxu0 %v447_v49 }
 0x182   : > { %505 = vmatpush1.msra.mxu0 %v446_v50 }
 0x183   : > { %506 = vmatprep.subr.mxu0 %v445_v51  ;;  %v388_v53 = vpop.permute.xlu1 %387 }
 0x184   : > { %507 = vmatpush1.msra.mxu0 %v444_v54  ;;  %v441_v57 = vsel %vm439_vm9, %v388_v53, %v390_v52 }
 0x185   : > { %508 = vmatprep.subr.mxu0 %v443_v55  ;;  %v1450_v55 = vld [vmem:[%s2340_s2 + $0x8] sm:$0xff] }
 0x186   : > { %509 = vmatpush1.msra.mxu0 %v442_v56 }
 0x187   : > { %510 = vmatprep.subr.mxu0 %v441_v57  ;;  %v386_v58 = vpop.permute.xlu1 %385 }
 0x188   : > { %v440_v60 = vsel %vm439_vm9, %v386_v58, %v388_v53 }
 0x189   : > { %511 = vmatpush1.msra.mxu0 %v440_v60  ;;  %v383_v61 = vpop.permute.xlu0 %382 }
 0x18a   : > { %1448 = vmatmul.mubr.msk.f32.vlgmr.msra.gmra.mxu0 %vm476_vm10, %v378_v59 }
 0x18b   : > { %1068 = vmatprep.mubr.f32.mxu0 %v1667_v1  ;;  %v629_v14 = vpop.permute.xlu1 %628 }
 0x18d   : > { %v637_v9 = vpop.permute.xlu0 %636 }
 0x18f   : > { %v611_v18 = vpop.permute.xlu1 %610 }
 0x191   : > { %v620_v11 = vpop.permute.xlu0 %619 }
 0x195   : > { %v593_v16 = vpop.permute.xlu0 %592 }
 0x24a   : > { %v546_v62 = vpop.f32.mrf.mxu0 }
 0x24b   : > { %v547_v63 = vadd.f32 %v546_v62, %v383_v61 }
 0x24c   : > { %v548_v0 = vpop.f32.mrf.mxu0 }
 0x24d   : > { %v551_v2 = vmax.f32 %v547_v63, 0.0  ;;  %v549_v3 = vadd.f32 %v548_v0, %v383_v61 }
 0x24f   : > { %600 = vrot.lane.b32.xlu0 %v551_v2, %s1672_s28  ;;  %624 = vrot.lane.b32.xlu1 %v551_v2, %s1668_s23  ;;  %v552_v4 = vmax.f32 %v549_v3, 0.0  ;;  %v564_v5 = vmul.f32 %v551_v2, %v1834_v12  ;;  %v1978_v6 = vmul.f32 %v551_v2, %v1844_v17 }
 0x251   : > { %v565_v7 = vmul.f32 %v552_v4, %v1855_v20  ;;  %v1992_v8 = vmul.f32 %v552_v4, %v1837_v13 }
 0x253   : > { %626 = vrot.lane.b32.xlu0 %v552_v4, %s1668_s23  ;;  %632 = vrot.lane.b32.xlu1 %v564_v5, %s1669_s21 }
 0x257   : > { %606 = vrot.lane.b32.xlu1 %v564_v5, %s1671_s26  ;;  %615 = vrot.lane.b32.xlu0 %v1978_v6, %s1670_s24 }
 0x25b   : > { %602 = vrot.lane.b32.xlu1 %v552_v4, %s1672_s28  ;;  %594 = vrot.lane.b32.xlu0 %v1978_v6, %s1673_s29 }
 0x25f   : > { %583 = vrot.lane.b32.xlu1 %v564_v5, %s1674_s7  ;;  %608 = vrot.lane.b32.xlu0 %v565_v7, %s1671_s26 }
 0x263   : > { %634 = vrot.lane.b32.xlu1 %v565_v7, %s1669_s21  ;;  %572 = vrot.lane.b32.xlu0 %v551_v2, %s1675_s8 }
 0x267   : > { %617 = vrot.lane.b32.xlu1 %v1992_v8, %s1670_s24  ;;  %585 = vrot.lane.b32.xlu0 %v565_v7, %s1674_s7 }
 0x26b   : > { %581 = vrot.lane.b32.xlu1 %v1876_v27, %s1674_s7  ;;  %570 = vrot.lane.b32.xlu0 %v1667_v1, %s1675_s8 }
 0x26f   : > { %596 = vrot.lane.b32.xlu1 %v1992_v8, %s1673_s29 }
 0x273   : > { %574 = vrot.lane.b32.xlu1 %v552_v4, %s1675_s8 }
 0x2c1   : > { %v601_v19 = vpop.permute.xlu0 %600  ;;  %v625_v21 = vpop.permute.xlu1 %624 }
 0x2c2   : > { %673 = vrot.lane.b32.xlu1 %v601_v19, %s1676_s12  ;;  %691 = vrot.lane.b32.xlu0 %v625_v21, %s1676_s12 }
 0x2c5   : > { %v627_v22 = vpop.permute.xlu0 %626  ;;  %v633_v24 = vpop.permute.xlu1 %632 }
 0x2c6   : > { %697 = vrot.lane.b32.xlu1 %v633_v24, %s1676_s12  ;;  %v630_v31 = vsel %vm366_vm1, %v625_v21, %v627_v22  ;;  %v631_v42 = vsel %vm366_vm1, %v627_v22, %v629_v14 }
 0x2c9   : > { %v616_v25 = vpop.permute.xlu0 %615  ;;  %v607_v26 = vpop.permute.xlu1 %606 }
 0x2ca   : > { %685 = vrot.lane.b32.xlu1 %v616_v25, %s1676_s12  ;;  %679 = vrot.lane.b32.xlu0 %v607_v26, %s1676_s12 }
 0x2cd   : > { %v603_v29 = vpop.permute.xlu1 %602  ;;  %v595_v32 = vpop.permute.xlu0 %594 }
 0x2ce   : > { %677 = vrot.lane.b32.xlu0 %v603_v29, %s1676_s12  ;;  %v598_v34 = vsel %vm330_vm3, %v593_v16, %v595_v32  ;;  %v604_v44 = vsel %vm337_vm4, %v601_v19, %v603_v29 }
 0x2d1   : > { %v584_v30 = vpop.permute.xlu1 %583  ;;  %v609_v37 = vpop.permute.xlu0 %608 }
 0x2d2   : > { %693 = vrot.lane.b32.xlu0 %v630_v31, %s1676_s12  ;;  %v612_v48 = vsel %vm346_vm8, %v607_v26, %v609_v37  ;;  %v613_v54 = vsel %vm346_vm8, %v609_v37, %v611_v18 }
 0x2d5   : > { %v635_v33 = vpop.permute.xlu1 %634  ;;  %v573_v39 = vpop.permute.xlu0 %572 }
 0x2d6   : > { %667 = vrot.lane.b32.xlu0 %v598_v34, %s1676_s12  ;;  %v639_v45 = vsel %vm375_vm5, %v635_v33, %v637_v9  ;;  %v638_v49 = vsel %vm375_vm5, %v633_v24, %v635_v33 }
 0x2d9   : > { %v618_v35 = vpop.permute.xlu1 %617  ;;  %v586_v43 = vpop.permute.xlu0 %585 }
 0x2da   : > { %v622_v47 = vsel %vm356_vm7, %v618_v35, %v620_v11  ;;  %v621_v52 = vsel %vm356_vm7, %v616_v25, %v618_v35  ;;  %v588_v56 = vsel %vm318_vm6, %v584_v30, %v586_v43 }
 0x2dd   : > { %v582_v36 = vpop.permute.xlu1 %581  ;;  %v571_v51 = vpop.permute.xlu0 %570 }
 0x2de   : > { %v587_v46 = vsel %vm318_vm6, %v582_v36, %v584_v30  ;;  %v576_v53 = vsel %vm306_vm2, %v571_v51, %v573_v39 }
 0x2e1   : > { %v597_v38 = vpop.permute.xlu1 %596 }
 0x2e2   : > { %v599_v50 = vsel %vm330_vm3, %v595_v32, %v597_v38 }
 0x2e5   : > { %v575_v40 = vpop.permute.xlu1 %574 }
 0x2e6   : > { %659 = vrot.lane.b32.xlu1 %v575_v40, %s1676_s12  ;;  %v577_v41 = vsel %vm306_vm2, %v573_v39, %v575_v40 }
 0x2e7   : > { %657 = vrot.lane.b32.xlu0 %v577_v41, %s1676_s12 }
 0x2ea   : > { %695 = vrot.lane.b32.xlu1 %v631_v42, %s1676_s12 }
 0x2eb   : > { %665 = vrot.lane.b32.xlu0 %v586_v43, %s1676_s12 }
 0x2ee   : > { %675 = vrot.lane.b32.xlu1 %v604_v44, %s1676_s12 }
 0x2ef   : > { %701 = vrot.lane.b32.xlu0 %v639_v45, %s1676_s12 }
 0x2f2   : > { %661 = vrot.lane.b32.xlu1 %v587_v46, %s1676_s12 }
 0x2f3   : > { %689 = vrot.lane.b32.xlu0 %v622_v47, %s1676_s12  ;;  %v1449_v47 = vld [vmem:[%s2339_s1 + $0x8] sm:$0xff] }
 0x2f6   : > { %671 = vrot.lane.b32.xlu1 %v597_v38, %s1676_s12 }
 0x2f7   : > { %681 = vrot.lane.b32.xlu0 %v612_v48, %s1676_s12 }
 0x2fa   : > { %699 = vrot.lane.b32.xlu1 %v638_v49, %s1676_s12 }
 0x2fb   : > { %669 = vrot.lane.b32.xlu0 %v599_v50, %s1676_s12 }
 0x2fe   : > { %687 = vrot.lane.b32.xlu1 %v621_v52, %s1676_s12 }
 0x2ff   : > { %655 = vrot.lane.b32.xlu0 %v576_v53, %s1676_s12 }
 0x302   : > { %683 = vrot.lane.b32.xlu1 %v613_v54, %s1676_s12 }
 0x303   : > { %653 = vrot.lane.b32.xlu0 %v1992_v8, %s1676_s12 }
 0x306   : > { %663 = vrot.lane.b32.xlu1 %v588_v56, %s1676_s12 }
 0x307   : > { %646 = vperm.xlu0 %1535, %v1450_v55  }
 0x30a   : > { %651 = vrot.lane.b32.xlu1 %v1978_v6, %s1676_s12 }
 0x30b   : > { %890 = vrot.lane.b32.xlu0 %v1667_v1, %s1668_s23 }
 0x30e   : > { %649 = vrot.lane.b32.xlu1 %v1880_v28, %s1676_s12 }
 0x30f   : > { %872 = vrot.lane.b32.xlu0 %v1840_v15, %s1671_s26 }
 0x312   : > { %898 = vrot.lane.b32.xlu1 %v1840_v15, %s1669_s21 }
 0x316   : > { %881 = vrot.lane.b32.xlu1 %v1864_v23, %s1670_s24 }
 0x31a   : > { %854 = vrot.lane.b32.xlu1 %v1880_v28, %s1673_s29 }
 0x334   : > { %v692_v57 = vpop.permute.xlu0 %691  ;;  %v674_v59 = vpop.permute.xlu1 %673 }
 0x338   : > { %v698_v61 = vpop.permute.xlu1 %697 }
 0x33c   : > { %v680_v58 = vpop.permute.xlu0 %679  ;;  %v686_v63 = vpop.permute.xlu1 %685 }
 0x340   : > { %v678_v60 = vpop.permute.xlu0 %677 }
 0x344   : > { %v694_v62 = vpop.permute.xlu0 %693 }
 0x345   : > { %v717_v24 = vsel %vm439_vm9, %v692_v57, %v694_v62 }
 0x348   : > { %v668_v0 = vpop.permute.xlu0 %667 }
 0x358   : > { %v660_v2 = vpop.permute.xlu1 %659 }
 0x359   : > { %v658_v3 = vpop.permute.xlu0 %657 }
 0x35a   : > { %v706_v42 = vsel %vm439_vm9, %v658_v3, %v660_v2 }
 0x35c   : > { %v696_v4 = vpop.permute.xlu1 %695 }
 0x35d   : > { %v666_v5 = vpop.permute.xlu0 %665  ;;  %v718_v21 = vsel %vm439_vm9, %v694_v62, %v696_v4 }
 0x360   : > { %v676_v6 = vpop.permute.xlu1 %675 }
 0x361   : > { %v702_v7 = vpop.permute.xlu0 %701  ;;  %v712_v33 = vsel %vm439_vm9, %v676_v6, %v678_v60  ;;  %v711_v36 = vsel %vm439_vm9, %v674_v59, %v676_v6 }
 0x364   : > { %v662_v8 = vpop.permute.xlu1 %661 }
 0x365   : > { %v690_v9 = vpop.permute.xlu0 %689 }
 0x368   : > { %v672_v11 = vpop.permute.xlu1 %671 }
 0x369   : > { %v682_v14 = vpop.permute.xlu0 %681 }
 0x36a   : > { %v713_v32 = vsel %vm439_vm9, %v680_v58, %v682_v14 }
 0x36c   : > { %v700_v16 = vpop.permute.xlu1 %699 }
 0x36d   : > { %v720_v18 = vsel %vm439_vm9, %v700_v16, %v702_v7  ;;  %v719_v19 = vsel %vm439_vm9, %v698_v61, %v700_v16  ;;  %v670_v29 = vpop.permute.xlu0 %669 }
 0x36e   : > { %756 = vmatprep.subr.mxu1 %v720_v18  ;;  %v710_v37 = vsel %vm439_vm9, %v670_v29, %v672_v11  ;;  %v709_v38 = vsel %vm439_vm9, %v668_v0, %v670_v29 }
 0x36f   : > { %757 = vmatpush1.msra.mxu1 %v719_v19 }
 0x370   : > { %758 = vmatprep.subr.mxu1 %v718_v21  ;;  %v688_v22 = vpop.permute.xlu1 %687 }
 0x371   : > { %759 = vmatpush1.msra.mxu1 %v717_v24  ;;  %v716_v25 = vsel %vm439_vm9, %v688_v22, %v690_v9  ;;  %v715_v26 = vsel %vm439_vm9, %v686_v63, %v688_v22  ;;  %v656_v34 = vpop.permute.xlu0 %655 }
 0x372   : > { %760 = vmatprep.subr.mxu1 %v716_v25  ;;  %v705_v44 = vsel %vm439_vm9, %v656_v34, %v658_v3 }
 0x373   : > { %761 = vmatpush1.msra.mxu1 %v715_v26 }
 0x374   : > { %v684_v30 = vpop.permute.xlu1 %683 }
 0x375   : > { %v714_v31 = vsel %vm439_vm9, %v682_v14, %v684_v30  ;;  %v654_v43 = vpop.permute.xlu0 %653 }
 0x376   : > { %762 = vmatprep.subr.mxu1 %v714_v31 }
 0x377   : > { %763 = vmatpush1.msra.mxu1 %v713_v32 }
 0x378   : > { %764 = vmatprep.subr.mxu1 %v712_v33  ;;  %v664_v35 = vpop.permute.xlu1 %663 }
 0x379   : > { %765 = vmatpush1.msra.mxu1 %v711_v36  ;;  %v708_v39 = vsel %vm439_vm9, %v664_v35, %v666_v5  ;;  %v707_v41 = vsel %vm439_vm9, %v662_v8, %v664_v35 }
 0x37a   : > { %766 = vmatprep.subr.mxu1 %v710_v37 }
 0x37b   : > { %767 = vmatpush1.msra.mxu1 %v709_v38 }
 0x37c   : > { %768 = vmatprep.subr.mxu1 %v708_v39  ;;  %v652_v40 = vpop.permute.xlu1 %651 }
 0x37d   : > { %769 = vmatpush1.msra.mxu1 %v707_v41  ;;  %v704_v45 = vsel %vm439_vm9, %v652_v40, %v654_v43  ;;  %v1453_v43 = vld [vmem:[%s2340_s2 + $0x10] sm:$0xff] }
 0x37e   : > { %770 = vmatprep.subr.mxu1 %v706_v42 }
 0x37f   : > { %771 = vmatpush1.msra.mxu1 %v705_v44 }
 0x380   : > { %772 = vmatprep.subr.mxu1 %v704_v45  ;;  %v650_v46 = vpop.permute.xlu1 %649 }
 0x381   : > { %v703_v48 = vsel %vm439_vm9, %v650_v46, %v652_v40 }
 0x382   : > { %773 = vmatpush1.msra.mxu1 %v703_v48  ;;  %v647_v49 = vpop.permute.xlu0 %646 }
 0x383   : > { %1451 = vmatmul.mubr.msk.f32.vlgmr.msra.gmra.mxu1 %vm476_vm10, %v1449_v47 }
 0x384   : > { %1328 = vmatprep.mubr.f32.mxu1 %v1667_v1  ;;  %v899_v60 = vpop.permute.xlu1 %898 }
 0x386   : > { %v891_v61 = vpop.permute.xlu0 %890 }
 0x388   : > { %v882_v62 = vpop.permute.xlu1 %881 }
 0x38a   : > { %v873_v63 = vpop.permute.xlu0 %872 }
 0x38c   : > { %v855_v0 = vpop.permute.xlu1 %854 }
 0x443   : > { %v808_v50 = vpop.f32.mrf.mxu1 }
 0x444   : > { %v809_v51 = vadd.f32 %v808_v50, %v647_v49 }
 0x445   : > { %v810_v53 = vpop.f32.mrf.mxu1 }
 0x446   : > { %v813_v52 = vmax.f32 %v809_v51, 0.0  ;;  %v811_v54 = vadd.f32 %v810_v53, %v647_v49 }
 0x448   : > { %862 = vrot.lane.b32.xlu1 %v813_v52, %s1672_s28  ;;  %886 = vrot.lane.b32.xlu0 %v813_v52, %s1668_s23  ;;  %v826_v55 = vmul.f32 %v813_v52, %v1834_v12  ;;  %v814_v56 = vmax.f32 %v811_v54, 0.0  ;;  %v2093_v57 = vmul.f32 %v813_v52, %v1844_v17 }
 0x44a   : > { %v827_v58 = vmul.f32 %v814_v56, %v1855_v20  ;;  %v2103_v59 = vmul.f32 %v814_v56, %v1837_v13 }
 0x44c   : > { %868 = vrot.lane.b32.xlu0 %v826_v55, %s1671_s26  ;;  %894 = vrot.lane.b32.xlu1 %v826_v55, %s1669_s21 }
 0x450   : > { %864 = vrot.lane.b32.xlu0 %v814_v56, %s1672_s28  ;;  %888 = vrot.lane.b32.xlu1 %v814_v56, %s1668_s23 }
 0x454   : > { %845 = vrot.lane.b32.xlu0 %v826_v55, %s1674_s7  ;;  %877 = vrot.lane.b32.xlu1 %v2093_v57, %s1670_s24 }
 0x458   : > { %896 = vrot.lane.b32.xlu0 %v827_v58, %s1669_s21  ;;  %856 = vrot.lane.b32.xlu1 %v2093_v57, %s1673_s29 }
 0x45c   : > { %879 = vrot.lane.b32.xlu0 %v2103_v59, %s1670_s24  ;;  %870 = vrot.lane.b32.xlu1 %v827_v58, %s1671_s26 }
 0x460   : > { %843 = vrot.lane.b32.xlu0 %v1876_v27, %s1674_s7  ;;  %834 = vrot.lane.b32.xlu1 %v813_v52, %s1675_s8 }
 0x464   : > { %858 = vrot.lane.b32.xlu0 %v2103_v59, %s1673_s29  ;;  %847 = vrot.lane.b32.xlu1 %v827_v58, %s1674_s7 }
 0x468   : > { %836 = vrot.lane.b32.xlu0 %v814_v56, %s1675_s8  ;;  %832 = vrot.lane.b32.xlu1 %v1667_v1, %s1675_s8 }
 0x4ba   : > { %v887_v2 = vpop.permute.xlu0 %886  ;;  %v863_v3 = vpop.permute.xlu1 %862 }
 0x4bb   : > { %953 = vrot.lane.b32.xlu1 %v887_v2, %s1676_s12  ;;  %935 = vrot.lane.b32.xlu0 %v863_v3, %s1676_s12 }
 0x4be   : > { %v869_v4 = vpop.permute.xlu0 %868  ;;  %v895_v5 = vpop.permute.xlu1 %894 }
 0x4bf   : > { %941 = vrot.lane.b32.xlu1 %v869_v4, %s1676_s12  ;;  %959 = vrot.lane.b32.xlu0 %v895_v5, %s1676_s12 }
 0x4c2   : > { %v865_v6 = vpop.permute.xlu0 %864  ;;  %v889_v7 = vpop.permute.xlu1 %888 }
 0x4c3   : > { %939 = vrot.lane.b32.xlu1 %v865_v6, %s1676_s12  ;;  %v892_v8 = vsel %vm366_vm1, %v887_v2, %v889_v7  ;;  %v893_v30 = vsel %vm366_vm1, %v889_v7, %v891_v61  ;;  %v866_v32 = vsel %vm337_vm4, %v863_v3, %v865_v6 }
 0x4c6   : > { %v846_v9 = vpop.permute.xlu0 %845  ;;  %v878_v11 = vpop.permute.xlu1 %877 }
 0x4c7   : > { %955 = vrot.lane.b32.xlu1 %v892_v8, %s1676_s12  ;;  %947 = vrot.lane.b32.xlu0 %v878_v11, %s1676_s12 }
 0x4ca   : > { %v897_v14 = vpop.permute.xlu0 %896  ;;  %v857_v16 = vpop.permute.xlu1 %856 }
 0x4cb   : > { %v860_v18 = vsel %vm330_vm3, %v855_v0, %v857_v16  ;;  %v901_v33 = vsel %vm375_vm5, %v897_v14, %v899_v60  ;;  %v900_v37 = vsel %vm375_vm5, %v895_v5, %v897_v14 }
 0x4cc   : > { %929 = vrot.lane.b32.xlu1 %v860_v18, %s1676_s12 }
 0x4ce   : > { %v880_v19 = vpop.permute.xlu0 %879  ;;  %v871_v22 = vpop.permute.xlu1 %870 }
 0x4cf   : > { %v884_v35 = vsel %vm356_vm7, %v880_v19, %v882_v62  ;;  %v874_v36 = vsel %vm346_vm8, %v869_v4, %v871_v22  ;;  %v883_v40 = vsel %vm356_vm7, %v878_v11, %v880_v19  ;;  %v875_v42 = vsel %vm346_vm8, %v871_v22, %v873_v63 }
 0x4d2   : > { %v844_v21 = vpop.permute.xlu0 %843  ;;  %v835_v25 = vpop.permute.xlu1 %834 }
 0x4d3   : > { %v849_v34 = vsel %vm318_vm6, %v844_v21, %v846_v9 }
 0x4d6   : > { %v859_v24 = vpop.permute.xlu0 %858  ;;  %v848_v31 = vpop.permute.xlu1 %847 }
 0x4d7   : > { %v861_v38 = vsel %vm330_vm3, %v857_v16, %v859_v24  ;;  %v850_v44 = vsel %vm318_vm6, %v846_v9, %v848_v31 }
 0x4da   : > { %v837_v26 = vpop.permute.xlu0 %836  ;;  %v833_v39 = vpop.permute.xlu1 %832 }
 0x4db   : > { %v839_v29 = vsel %vm306_vm2, %v835_v25, %v837_v26  ;;  %921 = vrot.lane.b32.xlu0 %v837_v26, %s1676_s12  ;;  %v838_v41 = vsel %vm306_vm2, %v833_v39, %v835_v25 }
 0x4dc   : > { %919 = vrot.lane.b32.xlu1 %v839_v29, %s1676_s12 }
 0x4df   : > { %957 = vrot.lane.b32.xlu0 %v893_v30, %s1676_s12 }
 0x4e0   : > { %927 = vrot.lane.b32.xlu1 %v848_v31, %s1676_s12 }
 0x4e3   : > { %937 = vrot.lane.b32.xlu0 %v866_v32, %s1676_s12 }
 0x4e4   : > { %963 = vrot.lane.b32.xlu1 %v901_v33, %s1676_s12  ;;  %v1452_v33 = vld [vmem:[%s2339_s1 + $0x10] sm:$0xff] }
 0x4e7   : > { %923 = vrot.lane.b32.xlu0 %v849_v34, %s1676_s12 }
 0x4e8   : > { %951 = vrot.lane.b32.xlu1 %v884_v35, %s1676_s12 }
 0x4eb   : > { %933 = vrot.lane.b32.xlu0 %v859_v24, %s1676_s12 }
 0x4ec   : > { %943 = vrot.lane.b32.xlu1 %v874_v36, %s1676_s12 }
 0x4ef   : > { %961 = vrot.lane.b32.xlu0 %v900_v37, %s1676_s12 }
 0x4f0   : > { %931 = vrot.lane.b32.xlu1 %v861_v38, %s1676_s12 }
 0x4f3   : > { %949 = vrot.lane.b32.xlu0 %v883_v40, %s1676_s12 }
 0x4f4   : > { %917 = vrot.lane.b32.xlu1 %v838_v41, %s1676_s12 }
 0x4f7   : > { %945 = vrot.lane.b32.xlu0 %v875_v42, %s1676_s12 }
 0x4f8   : > { %915 = vrot.lane.b32.xlu1 %v2103_v59, %s1676_s12 }
 0x4fb   : > { %925 = vrot.lane.b32.xlu0 %v850_v44, %s1676_s12 }
 0x4fc   : > { %908 = vperm.xlu1 %1536, %v1453_v43  }
 0x4ff   : > { %913 = vrot.lane.b32.xlu0 %v2093_v57, %s1676_s12 }
 0x500   : > { %1150 = vrot.lane.b32.xlu1 %v1667_v1, %s1668_s23 }
 0x503   : > { %911 = vrot.lane.b32.xlu0 %v1880_v28, %s1676_s12 }
 0x504   : > { %1132 = vrot.lane.b32.xlu1 %v1840_v15, %s1671_s26 }
 0x507   : > { %1158 = vrot.lane.b32.xlu0 %v1840_v15, %s1669_s21 }
 0x50b   : > { %1141 = vrot.lane.b32.xlu0 %v1864_v23, %s1670_s24 }
 0x50f   : > { %1114 = vrot.lane.b32.xlu0 %v1880_v28, %s1673_s29 }
 0x52d   : > { %v954_v45 = vpop.permute.xlu1 %953  ;;  %v936_v48 = vpop.permute.xlu0 %935 }
 0x531   : > { %v942_v46 = vpop.permute.xlu1 %941  ;;  %v960_v50 = vpop.permute.xlu0 %959 }
 0x535   : > { %v940_v47 = vpop.permute.xlu1 %939 }
 0x539   : > { %v956_v49 = vpop.permute.xlu1 %955  ;;  %v948_v51 = vpop.permute.xlu0 %947 }
 0x53a   : > { %v979_v2 = vsel %vm439_vm9, %v954_v45, %v956_v49 }
 0x53e   : > { %v930_v52 = vpop.permute.xlu1 %929 }
 0x54d   : > { %v922_v53 = vpop.permute.xlu0 %921 }
 0x54e   : > { %v920_v54 = vpop.permute.xlu1 %919 }
 0x54f   : > { %v968_v26 = vsel %vm439_vm9, %v920_v54, %v922_v53 }
 0x551   : > { %v958_v55 = vpop.permute.xlu0 %957 }
 0x552   : > { %v928_v56 = vpop.permute.xlu1 %927  ;;  %v980_v0 = vsel %vm439_vm9, %v956_v49, %v958_v55 }
 0x555   : > { %v938_v57 = vpop.permute.xlu0 %937 }
 0x556   : > { %v964_v15 = vpop.permute.xlu1 %963  ;;  %v974_v11 = vsel %vm439_vm9, %v938_v57, %v940_v47  ;;  %v973_v14 = vsel %vm439_vm9, %v936_v48, %v938_v57 }
 0x559   : > { %v924_v58 = vpop.permute.xlu0 %923 }
 0x55a   : > { %v952_v59 = vpop.permute.xlu1 %951 }
 0x55d   : > { %v934_v23 = vpop.permute.xlu0 %933 }
 0x55e   : > { %v944_v60 = vpop.permute.xlu1 %943 }
 0x55f   : > { %v975_v9 = vsel %vm439_vm9, %v942_v46, %v944_v60 }
 0x561   : > { %v962_v61 = vpop.permute.xlu0 %961 }
 0x562   : > { %v981_v62 = vsel %vm439_vm9, %v960_v50, %v962_v61  ;;  %v982_v63 = vsel %vm439_vm9, %v962_v61, %v964_v15  ;;  %v932_v6 = vpop.permute.xlu1 %931 }
 0x563   : > { %1018 = vmatprep.subr.mxu0 %v982_v63  ;;  %v972_v19 = vsel %vm439_vm9, %v932_v6, %v934_v23  ;;  %v971_v21 = vsel %vm439_vm9, %v930_v52, %v932_v6 }
 0x564   : > { %1019 = vmatpush1.msra.mxu0 %v981_v62 }
 0x565   : > { %v950_v3 = vpop.permute.xlu0 %949  ;;  %1020 = vmatprep.subr.mxu0 %v980_v0 }
 0x566   : > { %v977_v4 = vsel %vm439_vm9, %v948_v51, %v950_v3  ;;  %1021 = vmatpush1.msra.mxu0 %v979_v2  ;;  %v978_v5 = vsel %vm439_vm9, %v950_v3, %v952_v59  ;;  %v918_v16 = vpop.permute.xlu1 %917 }
 0x567   : > { %1022 = vmatprep.subr.mxu0 %v978_v5  ;;  %v967_v29 = vsel %vm439_vm9, %v918_v16, %v920_v54 }
 0x568   : > { %1023 = vmatpush1.msra.mxu0 %v977_v4 }
 0x569   : > { %v946_v7 = vpop.permute.xlu0 %945 }
 0x56a   : > { %v976_v8 = vsel %vm439_vm9, %v944_v60, %v946_v7  ;;  %v916_v30 = vpop.permute.xlu1 %915 }
 0x56b   : > { %1024 = vmatprep.subr.mxu0 %v976_v8 }
 0x56c   : > { %1025 = vmatpush1.msra.mxu0 %v975_v9 }
 0x56d   : > { %v926_v18 = vpop.permute.xlu0 %925  ;;  %1026 = vmatprep.subr.mxu0 %v974_v11  ;;  %v1456_v11 = vld [vmem:[%s2340_s2 + $0x18] sm:$0xff] }
 0x56e   : > { %1027 = vmatpush1.msra.mxu0 %v973_v14  ;;  %v970_v22 = vsel %vm439_vm9, %v926_v18, %v928_v56  ;;  %v969_v24 = vsel %vm439_vm9, %v924_v58, %v926_v18 }
 0x56f   : > { %1028 = vmatprep.subr.mxu0 %v972_v19 }
 0x570   : > { %1029 = vmatpush1.msra.mxu0 %v971_v21 }
 0x571   : > { %v914_v25 = vpop.permute.xlu0 %913  ;;  %1030 = vmatprep.subr.mxu0 %v970_v22 }
 0x572   : > { %1031 = vmatpush1.msra.mxu0 %v969_v24  ;;  %v966_v31 = vsel %vm439_vm9, %v914_v25, %v916_v30 }
 0x573   : > { %1032 = vmatprep.subr.mxu0 %v968_v26 }
 0x574   : > { %1033 = vmatpush1.msra.mxu0 %v967_v29 }
 0x575   : > { %v912_v32 = vpop.permute.xlu0 %911  ;;  %1034 = vmatprep.subr.mxu0 %v966_v31 }
 0x576   : > { %v965_v34 = vsel %vm439_vm9, %v912_v32, %v914_v25 }
 0x577   : > { %1035 = vmatpush1.msra.mxu0 %v965_v34  ;;  %v909_v35 = vpop.permute.xlu1 %908 }
 0x578   : > { %1454 = vmatmul.mubr.msk.f32.vlgmr.msra.gmra.mxu0 %vm476_vm10, %v1452_v33 }
 0x638   : > { %v1070_v36 = vpop.f32.mrf.mxu0 }
 0x639   : > { %v1071_v37 = vadd.f32 %v1070_v36, %v909_v35 }
 0x63a   : > { %v1072_v39 = vpop.f32.mrf.mxu0 }
 0x63b   : > { %1122 = vrot.lane.b32.xlu0 %v1071_v37, %s1672_s28  ;;  %1146 = vrot.lane.b32.xlu1 %v1071_v37, %s1668_s23  ;;  %v1086_v38 = vmul.f32 %v1071_v37, %v1834_v12  ;;  %v1073_v40 = vadd.f32 %v1072_v39, %v909_v35  ;;  %v2205_v41 = vmul.f32 %v1071_v37, %v1844_v17 }
 0x63d   : > { %v1087_v12 = vmul.f32 %v1073_v40, %v1855_v20  ;;  %v2215_v42 = vmul.f32 %v1073_v40, %v1837_v13  ;;  %v1159_v13 = vpop.permute.xlu0 %1158  ;;  %v1151_v20 = vpop.permute.xlu1 %1150 }
 0x63f   : > { %1128 = vrot.lane.b32.xlu1 %v1086_v38, %s1671_s26  ;;  %1154 = vrot.lane.b32.xlu0 %v1086_v38, %s1669_s21 }
 0x641   : > { %v1142_v17 = vpop.permute.xlu0 %1141  ;;  %v1133_v44 = vpop.permute.xlu1 %1132 }
 0x643   : > { %1124 = vrot.lane.b32.xlu1 %v1073_v40, %s1672_s28  ;;  %1148 = vrot.lane.b32.xlu0 %v1073_v40, %s1668_s23  ;;  %s1464_s28 = sshll.u32 %s1725_s19, 7  ;;  %s1678_s19 = smov [#allocation8]  }
 0x644   : > { %s1355_s14 = scalar_lea.hbm %s2342_s4, %s1464_s28 }
 0x645   : > { %v1115_v43 = vpop.permute.xlu0 %1114 }
 0x647   : > { %1105 = vrot.lane.b32.xlu1 %v1086_v38, %s1674_s7  ;;  %1137 = vrot.lane.b32.xlu0 %v2205_v41, %s1670_s24 }
 0x64b   : > { %1156 = vrot.lane.b32.xlu1 %v1087_v12, %s1669_s21  ;;  %1116 = vrot.lane.b32.xlu0 %v2205_v41, %s1673_s29 }
 0x64f   : > { %1139 = vrot.lane.b32.xlu1 %v2215_v42, %s1670_s24  ;;  %1130 = vrot.lane.b32.xlu0 %v1087_v12, %s1671_s26 }
 0x653   : > { %1103 = vrot.lane.b32.xlu1 %v1876_v27, %s1674_s7  ;;  %1094 = vrot.lane.b32.xlu0 %v1071_v37, %s1675_s8 }
 0x657   : > { %1118 = vrot.lane.b32.xlu1 %v2215_v42, %s1673_s29  ;;  %1107 = vrot.lane.b32.xlu0 %v1087_v12, %s1674_s7  ;;  %s228_s29 = scalar_lea.vmem [#allocation8], %s1445_s30  ;;  %s1597_s30 = sshll.u32 %s1678_s19, 4  ;;  %s1598_s30 = int_to_ptr.vmem [resolvable:$false] %s1597_s30 }
 0x658   : > { %s1357_s7 = sshll.u32 %s228_s29, 4  ;;  %s1358_s7 = int_to_ptr.vmem [resolvable:$true] %s1357_s7 }
 0x659   : > { %s1593_s5 = scalar_lea.vmem %s1358_s7, 128  ;;  %p1600_p10 = scmp.lt.s32.totalorder %s1358_s7, %s1598_s30 }
 0x65a   : > { %p1594_p8 = scmp.ne.s32.totalorder %s1358_s7, %s1593_s5 }
 0x65b   : > { %1096 = vrot.lane.b32.xlu1 %v1073_v40, %s1675_s8  ;;  %1092 = vrot.lane.b32.xlu0 %v1667_v1, %s1675_s8 }
 0x65c   : > { %p1595_p11 = pnand %p1594_p8, %p2358_p3 }
 0x65e   : > { %p1596_p7 = pneg %p1595_p11 }
 0x6ad   : > { %v1123_v45 = vpop.permute.xlu0 %1122  ;;  %v1147_v46 = vpop.permute.xlu1 %1146 }
 0x6ae   : > { %1195 = vrot.lane.b32.xlu1 %v1123_v45, %s1676_s12  ;;  %1213 = vrot.lane.b32.xlu0 %v1147_v46, %s1676_s12 }
 0x6b1   : > { %v1155_v27 = vpop.permute.xlu0 %1154  ;;  %v1129_v47 = vpop.permute.xlu1 %1128 }
 0x6b2   : > { %1219 = vrot.lane.b32.xlu1 %v1155_v27, %s1676_s12  ;;  %1201 = vrot.lane.b32.xlu0 %v1129_v47, %s1676_s12 }
 0x6b5   : > { %v1149_v48 = vpop.permute.xlu0 %1148  ;;  %v1125_v49 = vpop.permute.xlu1 %1124 }
 0x6b6   : > { %1199 = vrot.lane.b32.xlu0 %v1125_v49, %s1676_s12  ;;  %v1152_v1 = vsel %vm366_vm1, %v1147_v46, %v1149_v48  ;;  %v1153_v60 = vsel %vm366_vm1, %v1149_v48, %v1151_v20  ;;  %v1126_v62 = vsel %vm337_vm4, %v1123_v45, %v1125_v49 }
 0x6b9   : > { %v1138_v50 = vpop.permute.xlu0 %1137  ;;  %v1106_v51 = vpop.permute.xlu1 %1105 }
 0x6ba   : > { %1207 = vrot.lane.b32.xlu1 %v1138_v50, %s1676_s12  ;;  %1215 = vrot.lane.b32.xlu0 %v1152_v1, %s1676_s12 }
 0x6bd   : > { %v1117_v52 = vpop.permute.xlu0 %1116  ;;  %v1157_v53 = vpop.permute.xlu1 %1156 }
 0x6be   : > { %v1120_v54 = vsel %vm330_vm3, %v1115_v43, %v1117_v52  ;;  %v1161_v63 = vsel %vm375_vm5, %v1157_v53, %v1159_v13  ;;  %v1160_v4 = vsel %vm375_vm5, %v1155_v27, %v1157_v53 }
 0x6bf   : > { %1189 = vrot.lane.b32.xlu0 %v1120_v54, %s1676_s12 }
 0x6c1   : > { %v1140_v55 = vpop.permute.xlu1 %1139  ;;  %v1131_v57 = vpop.permute.xlu0 %1130 }
 0x6c2   : > { %v1144_v2 = vsel %vm356_vm7, %v1140_v55, %v1142_v17  ;;  %v1134_v3 = vsel %vm346_vm8, %v1129_v47, %v1131_v57  ;;  %v1143_v7 = vsel %vm356_vm7, %v1138_v50, %v1140_v55  ;;  %v1135_v9 = vsel %vm346_vm8, %v1131_v57, %v1133_v44 }
 0x6c5   : > { %v1104_v56 = vpop.permute.xlu1 %1103  ;;  %v1095_v58 = vpop.permute.xlu0 %1094 }
 0x6c6   : > { %v1109_v0 = vsel %vm318_vm6, %v1104_v56, %v1106_v51 }
 0x6c9   : > { %v1119_v15 = vpop.permute.xlu1 %1118  ;;  %v1108_v61 = vpop.permute.xlu0 %1107 }
 0x6ca   : > { %v1121_v5 = vsel %vm330_vm3, %v1117_v52, %v1119_v15  ;;  %v1110_v14 = vsel %vm318_vm6, %v1106_v51, %v1108_v61 }
 0x6cd   : > { %v1097_v59 = vpop.permute.xlu1 %1096  ;;  %v1093_v6 = vpop.permute.xlu0 %1092 }
 0x6ce   : > { %v1099_v23 = vsel %vm306_vm2, %v1095_v58, %v1097_v59  ;;  %1181 = vrot.lane.b32.xlu1 %v1097_v59, %s1676_s12  ;;  %v1098_v8 = vsel %vm306_vm2, %v1093_v6, %v1095_v58 }
 0x6cf   : > { %1179 = vrot.lane.b32.xlu0 %v1099_v23, %s1676_s12 }
 0x6d2   : > { %1217 = vrot.lane.b32.xlu1 %v1153_v60, %s1676_s12 }
 0x6d3   : > { %1187 = vrot.lane.b32.xlu0 %v1108_v61, %s1676_s12 }
 0x6d6   : > { %1197 = vrot.lane.b32.xlu1 %v1126_v62, %s1676_s12 }
 0x6d7   : > { %1223 = vrot.lane.b32.xlu0 %v1161_v63, %s1676_s12  ;;  %v1538_v63 = vld [vmem:[%s1817_s6] sm:$0xff]  ;;  %s1599_s6 = scalar_lea.vmem %s1598_s30, 256 }
 0x6d8   : > { %p1601_p2 = scmp.lt.s32.totalorder %s1599_s6, %s1593_s5 }
 0x6da   : > { %1183 = vrot.lane.b32.xlu1 %v1109_v0, %s1676_s12  ;;  %p1602_p13 = por %p1601_p2, %p1600_p10 }
 0x6db   : > { %1211 = vrot.lane.b32.xlu0 %v1144_v2, %s1676_s12 }
 0x6dc   : > { %p1603_p0 = pnand %p1602_p13, %p1596_p7 }
 0x6de   : > { %1193 = vrot.lane.b32.xlu1 %v1119_v15, %s1676_s12  ;;  %v1455_v15 = vld [vmem:[%s2339_s1 + $0x18] sm:$0xff] }
 0x6df   : > { %1203 = vrot.lane.b32.xlu0 %v1134_v3, %s1676_s12 }
 0x6e2   : > { %1221 = vrot.lane.b32.xlu1 %v1160_v4, %s1676_s12 }
 0x6e3   : > { %1191 = vrot.lane.b32.xlu0 %v1121_v5, %s1676_s12 }
 0x6e6   : > { %1209 = vrot.lane.b32.xlu1 %v1143_v7, %s1676_s12 }
 0x6e7   : > { %1177 = vrot.lane.b32.xlu0 %v1098_v8, %s1676_s12 }
 0x6ea   : > { %1205 = vrot.lane.b32.xlu1 %v1135_v9, %s1676_s12 }
 0x6eb   : > { %1175 = vrot.lane.b32.xlu0 %v2215_v42, %s1676_s12 }
 0x6ee   : > { %1185 = vrot.lane.b32.xlu1 %v1110_v14, %s1676_s12 }
 0x6ef   : > { %1168 = vperm.xlu0 %1535, %v1456_v11  }
 0x6f2   : > { %1173 = vrot.lane.b32.xlu1 %v2205_v41, %s1676_s12 }
 0x6f6   : > { %1171 = vrot.lane.b32.xlu1 %v1880_v28, %s1676_s12 }
 0x720   : > { %v1214_v16 = vpop.permute.xlu0 %1213  ;;  %v1196_v21 = vpop.permute.xlu1 %1195 }
 0x724   : > { %v1202_v18 = vpop.permute.xlu0 %1201  ;;  %v1220_v24 = vpop.permute.xlu1 %1219 }
 0x728   : > { %v1200_v19 = vpop.permute.xlu0 %1199 }
 0x72c   : > { %v1216_v22 = vpop.permute.xlu0 %1215  ;;  %v1208_v25 = vpop.permute.xlu1 %1207 }
 0x72d   : > { %v1239_v12 = vsel %vm439_vm9, %v1214_v16, %v1216_v22 }
 0x731   : > { %v1190_v26 = vpop.permute.xlu0 %1189 }
 0x740   : > { %v1182_v29 = vpop.permute.xlu1 %1181 }
 0x741   : > { %v1180_v30 = vpop.permute.xlu0 %1179 }
 0x742   : > { %v1228_v53 = vsel %vm439_vm9, %v1180_v30, %v1182_v29 }
 0x744   : > { %v1218_v31 = vpop.permute.xlu1 %1217 }
 0x745   : > { %v1188_v32 = vpop.permute.xlu0 %1187  ;;  %v1240_v41 = vsel %vm439_vm9, %v1216_v22, %v1218_v31 }
 0x748   : > { %v1198_v33 = vpop.permute.xlu1 %1197 }
 0x749   : > { %v1224_v34 = vpop.permute.xlu0 %1223  ;;  %v1234_v46 = vsel %vm439_vm9, %v1198_v33, %v1200_v19  ;;  %v1233_v27 = vsel %vm439_vm9, %v1196_v21, %v1198_v33 }
 0x74c   : > { %v1184_v35 = vpop.permute.xlu1 %1183 }
 0x74d   : > { %v1212_v36 = vpop.permute.xlu0 %1211 }
 0x750   : > { %v1194_v37 = vpop.permute.xlu1 %1193 }
 0x751   : > { %v1204_v38 = vpop.permute.xlu0 %1203 }
 0x752   : > { %v1235_v45 = vsel %vm439_vm9, %v1202_v18, %v1204_v38 }
 0x754   : > { %v1222_v39 = vpop.permute.xlu1 %1221 }
 0x755   : > { %v1241_v28 = vsel %vm439_vm9, %v1220_v24, %v1222_v39  ;;  %v1242_v40 = vsel %vm439_vm9, %v1222_v39, %v1224_v34  ;;  %v1192_v20 = vpop.permute.xlu0 %1191 }
 0x756   : > { %1278 = vmatprep.subr.mxu1 %v1242_v40  ;;  %v1232_v49 = vsel %vm439_vm9, %v1192_v20, %v1194_v37  ;;  %v1231_v1 = vsel %vm439_vm9, %v1190_v26, %v1192_v20 }
 0x757   : > { %1279 = vmatpush1.msra.mxu1 %v1241_v28 }
 0x758   : > { %1280 = vmatprep.subr.mxu1 %v1240_v41  ;;  %v1210_v42 = vpop.permute.xlu1 %1209 }
 0x759   : > { %v1237_v13 = vsel %vm439_vm9, %v1208_v25, %v1210_v42  ;;  %1281 = vmatpush1.msra.mxu1 %v1239_v12  ;;  %v1238_v17 = vsel %vm439_vm9, %v1210_v42, %v1212_v36  ;;  %v1178_v47 = vpop.permute.xlu0 %1177 }
 0x75a   : > { %1282 = vmatprep.subr.mxu1 %v1238_v17  ;;  %v1227_v54 = vsel %vm439_vm9, %v1178_v47, %v1180_v30 }
 0x75b   : > { %1283 = vmatpush1.msra.mxu1 %v1237_v13 }
 0x75c   : > { %v1206_v43 = vpop.permute.xlu1 %1205 }
 0x75d   : > { %v1236_v44 = vsel %vm439_vm9, %v1204_v38, %v1206_v43  ;;  %v1176_v55 = vpop.permute.xlu0 %1175 }
 0x75e   : > { %1284 = vmatprep.subr.mxu1 %v1236_v44 }
 0x75f   : > { %1285 = vmatpush1.msra.mxu1 %v1235_v45 }
 0x760   : > { %1286 = vmatprep.subr.mxu1 %v1234_v46  ;;  %v1186_v48 = vpop.permute.xlu1 %1185 }
 0x761   : > { %1287 = vmatpush1.msra.mxu1 %v1233_v27  ;;  %v1230_v50 = vsel %vm439_vm9, %v1186_v48, %v1188_v32  ;;  %v1229_v51 = vsel %vm439_vm9, %v1184_v35, %v1186_v48 }
 0x762   : > { %1288 = vmatprep.subr.mxu1 %v1232_v49 }
 0x763   : > { %1289 = vmatpush1.msra.mxu1 %v1231_v1 }
 0x764   : > { %1290 = vmatprep.subr.mxu1 %v1230_v50  ;;  %v1174_v52 = vpop.permute.xlu1 %1173 }
 0x765   : > { %1291 = vmatpush1.msra.mxu1 %v1229_v51  ;;  %v1226_v56 = vsel %vm439_vm9, %v1174_v52, %v1176_v55 }
 0x766   : > { %1292 = vmatprep.subr.mxu1 %v1228_v53 }
 0x767   : > { %1293 = vmatpush1.msra.mxu1 %v1227_v54 }
 0x768   : > { %1294 = vmatprep.subr.mxu1 %v1226_v56  ;;  %v1172_v57 = vpop.permute.xlu1 %1171 }
 0x769   : > { %v1225_v58 = vsel %vm439_vm9, %v1172_v57, %v1174_v52 }
 0x76a   : > { %1295 = vmatpush1.msra.mxu1 %v1225_v58  ;;  %v1169_v59 = vpop.permute.xlu0 %1168 }
 0x76b   : > { %1457 = vmatmul.mubr.msk.f32.vlgmr.msra.gmra.mxu1 %vm476_vm10, %v1455_v15 }
 0x82b   : > { %v1330_v23 = vpop.f32.mrf.mxu1 }
 0x82c   : > { %v1331_v60 = vadd.f32 %v1330_v23, %v1169_v59 }
 0x82d   : > { %v1332_v61 = vpop.f32.mrf.mxu1 }
 0x82e   : > { %v1333_v62 = vadd.f32 %v1332_v61, %v1169_v59  ;;  %v1335_v0 = vadd.f32 %v1538_v63, %v1331_v60 }
 0x830   : > { %v1336_v2 = vadd.f32 %v1333_v62, %v1832_v10 }
 0x832   : > { %v1339_v3 = vcombine.low %v1335_v0, %v1336_v2 }
 0x834   : > { %1341 = vst [vmem:[%s228_s29] sm:$0xff] %v1339_v3 }
 0x835   : > { %1606 = shalt.err (!%p1603_p0)
}
 0x836   : > { %s1607_s13 = scalar_lea.hbm %s1355_s14, 128  ;;  %s1611_s23 = scalar_lea.hbm %s2342_s4, 256 }
 0x837   : > { %p1608_p5 = scmp.ne.s32.totalorder %s1355_s14, %s1607_s13  ;;  %p1612_p1 = scmp.lt.s32.totalorder %s1355_s14, %s2342_s4 }
 0x838   : > { %p1613_p4 = scmp.lt.s32.totalorder %s1611_s23, %s1607_s13 }
 0x839   : > { %p1609_p9 = pnand %p1608_p5, %p2358_p3 }
 0x83a   : > { %p1614_p6 = por %p1613_p4, %p1612_p1 }
 0x83b   : > { %p1610_p12 = pneg %p1609_p9 }
 0x83d   : > { %p1615_p8 = pnand %p1614_p6, %p1610_p12 }
 0x83f   : > { %1618 = shalt.err (!%p1615_p8)
}
 0x840   : > { %1471 = dma.vmem_to_hbm [thread:$0]  (%p2358_p3), %s1358_s7, 128, %s1355_s14, %s1343_s20  }
 0x841 PF: > { %s1369_s26 = sand.u32 1, %s1649_s15   ;;  %p2359_p11 = scmp.ne.s32.totalorder %s2348_s22, 0 }
 0x842   : > { %p2360_p7 = scmp.ge.s32.totalorder %s1661_s18, 2  ;;  %s1370_s28 = scalar_lea.sflag [#allocation5], %s1369_s26 }
 0x844   : > { %p1482_p10 = pnand %p2360_p7, %p2359_p11 }
 0x846   : > { %p1483_p2 = pneg %p1482_p10 }
 0x848   : > { %1644 = dma.done.wait (%p1483_p2), %s1370_s28, 128  }
 0x849   : > { %1646 = vsyncadd (%p1483_p2), %s1370_s28, 4294967168  ;;  %p18_p13 = scmp.ge.s32.totalorder %s1758_s27, 4   ;;  %s2361_s15 = smov %s1653_s16 }
 0x84a   : > { %s2362_s16 = smov %s1657_s17  ;;  %s2363_s17 = smov %s1775_s9 }
 0x84b   : > { %s2364_s18 = smov %s1758_s27  ;;  %20 = sbr.rel (!%p18_p13) target bundleno = 6 (0x6), region = 92 }
 0x850   :  { %1375 = vsyncpa [#allocation4], 1 }
 0x851   :  { %1377 = vsyncpa [#allocation4 + $0x1], 1 }
 0x852   :  { %1378 = vsyncpa [#allocation7], 1 }
 0x853   :  { %1379 = vsyncpa [#allocation5], 1 }
 0x854   :  { %1381 = vsyncpa [#allocation5 + $0x1], 1 }

</bundles_post_ra>
